<compile_context>
chip_gen: v7x
topology: tpu7x:2x2x1
jax: 0.10.0
libtpu: 0.0.40
codegen_flags: <defaults>
</compile_context>

<pallas_src>
import functools

import jax
import jax.numpy as jnp
from jax.experimental import pallas as pl
from jax.experimental.pallas import tpu as pltpu


# ----------------------------------------------------------------------------
# Kernel 1: chunked LSTM recurrence + masked max-pool over time (both
# sentences batched together).
# ----------------------------------------------------------------------------
def _make_lstm_kernel(t_blk, bp, h):
    def kernel(nsteps_ref,                         # SMEM scalar prefetch (1,)
               len_ref, mxinit_ref, x_ref, wih_ref, whh_ref, b_ref,  # inputs
               out_ref,                            # output [bp, h]
               h_sc, c_sc, mx_sc):                 # VMEM scratch
        chunk = pl.program_id(0)
        t0 = chunk * t_blk

        @pl.when(chunk == 0)
        def _init():
            h_sc[...] = jnp.zeros_like(h_sc)
            c_sc[...] = jnp.zeros_like(c_sc)
            # Per-row init: 0.0 if pad_packed_sequence's zero rows participate
            # in this row's max, else -inf.
            mx_sc[...] = jnp.broadcast_to(mxinit_ref[...], (bp, h))

        # Skip chunks entirely past max(lengths) of the whole batch.
        @pl.when(t0 < nsteps_ref[0])
        def _compute():
            # Hoisted input projection for the whole chunk: one big GEMM.
            xg = (jnp.dot(x_ref[...], wih_ref[...],
                          preferred_element_type=jnp.float32)
                  + b_ref[...])                    # [t_blk*bp, 4h]
            lengths = len_ref[...]                 # [bp, 1] int32
            hh = h_sc[...]
            cc = c_sc[...]
            mx = mx_sc[...]
            # Fully unrolled (static) inner loop over the chunk's timesteps;
            # slice starts (tt*bp) are static multiples of 8 sublanes.
            for tt in range(t_blk):
                g = (xg[tt * bp:(tt + 1) * bp, :]
                     + jnp.dot(hh, whh_ref[...],
                               preferred_element_type=jnp.float32))  # [bp, 4h]
                i_g = jax.nn.sigmoid(g[:, 0:h])
                f_g = jax.nn.sigmoid(g[:, h:2 * h])
                g_g = jnp.tanh(g[:, 2 * h:3 * h])
                o_g = jax.nn.sigmoid(g[:, 3 * h:4 * h])
                cc = f_g * cc + i_g * g_g
                hh = o_g * jnp.tanh(cc)
                mx = jnp.where((t0 + tt) < lengths,
                               jnp.maximum(mx, hh), mx)
            h_sc[...] = hh
            c_sc[...] = cc
            mx_sc[...] = mx

        @pl.when(chunk == pl.num_programs(0) - 1)
        def _finalize():
            out_ref[...] = mx_sc[...]

    return kernel


def lstm_maxpool(x2d, lens, mxinit, nsteps, wih4, whh4, b4, *, t_blk=8):
    """x2d: [Tp*Bp, E] time-major rows (row = t*Bp + b); returns pooled [Bp, H]."""
    bp = lens.shape[0]
    e = x2d.shape[1]
    h4 = wih4.shape[1]
    h = h4 // 4
    num_chunks = x2d.shape[0] // (bp * t_blk)
    kernel = _make_lstm_kernel(t_blk, bp, h)
    return pl.pallas_call(
        kernel,
        out_shape=jax.ShapeDtypeStruct((bp, h), jnp.float32),
        grid_spec=pltpu.PrefetchScalarGridSpec(
            num_scalar_prefetch=1,
            grid=(num_chunks,),
            in_specs=[
                pl.BlockSpec((bp, 1), lambda c, n: (0, 0)),           # lengths
                pl.BlockSpec((bp, 1), lambda c, n: (0, 0)),           # max init
                pl.BlockSpec((t_blk * bp, e), lambda c, n: (c, 0)),   # x chunk
                pl.BlockSpec((e, h4), lambda c, n: (0, 0)),           # W_ih4
                pl.BlockSpec((h, h4), lambda c, n: (0, 0)),           # W_hh4
                pl.BlockSpec((1, h4), lambda c, n: (0, 0)),           # bias4
            ],
            out_specs=pl.BlockSpec((bp, h), lambda c, n: (0, 0)),
            scratch_shapes=[pltpu.VMEM((bp, h), jnp.float32),         # h state
                            pltpu.VMEM((bp, h), jnp.float32),         # c state
                            pltpu.VMEM((bp, h), jnp.float32)],        # running max
        ),
        compiler_params=pltpu.CompilerParams(
            dimension_semantics=("arbitrary",)),
    )(nsteps, lens, mxinit, x2d, wih4, whh4, b4)


# ----------------------------------------------------------------------------
# Kernel 2: feature combination [u, v, |u-v|, u*v] + 3-layer MLP (no act,
# matching nn.Sequential of three Linear layers). W1 is split into 4
# row-chunks so no in-kernel lane concat is needed; the final output is
# lane-padded to a multiple of 128 (sliced back in the wrapper).
# ----------------------------------------------------------------------------
def mlp_kernel(u_ref, v_ref, w1_ref, b1_ref, w2_ref, b2_ref, w3_ref, b3_ref,
               out_ref):
    u = u_ref[...]
    v = v_ref[...]
    d = jnp.abs(u - v)
    p = u * v
    h1 = (jnp.dot(u, w1_ref[0], preferred_element_type=jnp.float32)
          + jnp.dot(v, w1_ref[1], preferred_element_type=jnp.float32)
          + jnp.dot(d, w1_ref[2], preferred_element_type=jnp.float32)
          + jnp.dot(p, w1_ref[3], preferred_element_type=jnp.float32)
          + b1_ref[...])
    h2 = jnp.dot(h1, w2_ref[...], preferred_element_type=jnp.float32) + b2_ref[...]
    out_ref[...] = (jnp.dot(h2, w3_ref[...], preferred_element_type=jnp.float32)
                    + b3_ref[...])


def mlp_head(u, v, w1, b1, w2, b2, w3, b3):
    bsz = u.shape[0]
    nl = w3.shape[-1]
    nlp = -(-nl // 128) * 128                       # lane-dense output width
    w3p = jnp.pad(w3, ((0, 0), (0, nlp - nl)))
    b3p = jnp.pad(b3, ((0, 0), (0, nlp - nl)))
    out = pl.pallas_call(
        mlp_kernel,
        out_shape=jax.ShapeDtypeStruct((bsz, nlp), jnp.float32),
    )(u, v, w1, b1, w2, b2, w3p, b3p)
    return out[:, :nl]


# ----------------------------------------------------------------------------
# Full forward (embedding lookup + padding/transpose are plain-JAX glue).
# ----------------------------------------------------------------------------
def lstm_maxpool_nli_forward(params, sentence1, lengths1, sentence2, lengths2,
                             *, t_blk=8):
    emb = params["embedding"]
    e1 = jnp.take(emb, sentence1, axis=0)            # [B, T1, E]
    e2 = jnp.take(emb, sentence2, axis=0)            # [B, T2, E]
    B, T1, E = e1.shape
    T2 = e2.shape[1]
    T = max(T1, T2)
    Tp = -(-T // t_blk) * t_blk                      # pad time to chunk multiple
    e1 = jnp.pad(e1, ((0, 0), (0, Tp - T1), (0, 0)))
    e2 = jnp.pad(e2, ((0, 0), (0, Tp - T2), (0, 0)))

    # Batch both sentences into one call; pad rows to a multiple of 8 sublanes.
    btot = 2 * B
    bp = -(-btot // 8) * 8
    x = jnp.concatenate([e1, e2], axis=0)            # [2B, Tp, E]
    x = jnp.pad(x, ((0, bp - btot), (0, 0), (0, 0))) # [Bp, Tp, E]
    x2d = jnp.swapaxes(x, 0, 1).reshape(Tp * bp, E)  # time-major rows

    l1 = lengths1.astype(jnp.int32)
    l2 = lengths2.astype(jnp.int32)
    lens = jnp.concatenate([l1, l2, jnp.zeros((bp - btot,), jnp.int32)])
    # Zero-row contribution of pad_packed_sequence, per row (per sentence batch).
    mx1 = jnp.where(l1 < jnp.max(l1), 0.0, -jnp.inf)
    mx2 = jnp.where(l2 < jnp.max(l2), 0.0, -jnp.inf)
    mxinit = jnp.concatenate([mx1, mx2, jnp.zeros((bp - btot,), jnp.float32)])
    nsteps = jnp.maximum(jnp.max(l1), jnp.max(l2)).astype(jnp.int32).reshape(1)

    pooled = lstm_maxpool(x2d,
                          lens.reshape(bp, 1),
                          mxinit.reshape(bp, 1).astype(jnp.float32),
                          nsteps,
                          params["w_ih"], params["w_hh"], params["b_lstm"],
                          t_blk=t_blk)
    u = pooled[0:B]
    v = pooled[B:2 * B]
    return mlp_head(u, v, params["w1"], params["b1"], params["w2"],
                    params["b2"], params["w3"], params["b3"])


# ----------------------------------------------------------------------------
# Pure-JAX reference (for correctness check). Fused-gate weight layout.
# ----------------------------------------------------------------------------
def _lstm_maxpool_ref(x_bte, lengths, wih4, whh4, b4):
    B, T, E = x_bte.shape
    H = whh4.shape[0]

    def step(carry, xt):
        h, c = carry
        g = xt @ wih4 + h @ whh4 + b4[0]
        i = jax.nn.sigmoid(g[:, 0:H])
        f = jax.nn.sigmoid(g[:, H:2 * H])
        gg = jnp.tanh(g[:, 2 * H:3 * H])
        o = jax.nn.sigmoid(g[:, 3 * H:4 * H])
        c = f * c + i * gg
        h = o * jnp.tanh(c)
        return (h, c), h

    (_, _), hs = jax.lax.scan(step,
                              (jnp.zeros((B, H), jnp.float32),
                               jnp.zeros((B, H), jnp.float32)),
                              jnp.swapaxes(x_bte, 0, 1))
    hs = jnp.swapaxes(hs, 0, 1)                      # [B, T, H]
    tmax = jnp.max(lengths)
    tids = jnp.arange(T)[None, :, None]
    vals = jnp.where(tids < lengths[:, None, None], hs,
                     jnp.where(tids < tmax, 0.0, -jnp.inf))
    return jnp.max(vals, axis=1)


def _forward_ref(params, sentence1, lengths1, sentence2, lengths2):
    emb = params["embedding"]
    e1 = jnp.take(emb, sentence1, axis=0)
    e2 = jnp.take(emb, sentence2, axis=0)
    u = _lstm_maxpool_ref(e1, lengths1, params["w_ih"], params["w_hh"],
                          params["b_lstm"])
    v = _lstm_maxpool_ref(e2, lengths2, params["w_ih"], params["w_hh"],
                          params["b_lstm"])
    combined = jnp.concatenate([u, v, jnp.abs(u - v), u * v], axis=-1)
    H = u.shape[-1]
    hid = params["w1"].shape[-1]
    w1_flat = params["w1"].reshape(4 * H, hid)
    h1 = combined @ w1_flat + params["b1"]
    h2 = h1 @ params["w2"] + params["b2"]
    return h2 @ params["w3"] + params["b3"]


# ----------------------------------------------------------------------------
# Deterministic parameter init + driver.
# ----------------------------------------------------------------------------
def init_params(key, vocab_size, E, H, hidden_dim, num_labels):
    keys = jax.random.split(key, 10)
    s_lstm = 1.0 / jnp.sqrt(H)
    s_mlp1 = 1.0 / jnp.sqrt(4 * H)
    s_mlp2 = 1.0 / jnp.sqrt(hidden_dim)
    params = {
        "embedding": jax.random.normal(keys[0], (vocab_size, E), jnp.float32),
        # Fused gate layout: columns are [i | f | g | o], each H wide.
        "w_ih": jax.random.uniform(keys[1], (E, 4 * H), jnp.float32, -s_lstm, s_lstm),
        "w_hh": jax.random.uniform(keys[2], (H, 4 * H), jnp.float32, -s_lstm, s_lstm),
        "b_lstm": jax.random.uniform(keys[3], (1, 4 * H), jnp.float32, -s_lstm, s_lstm),
        # W1 stored as 4 row-chunks matching [u, v, |u-v|, u*v].
        "w1": jax.random.uniform(keys[4], (4, H, hidden_dim), jnp.float32, -s_mlp1, s_mlp1),
        "b1": jax.random.uniform(keys[5], (1, hidden_dim), jnp.float32, -s_mlp1, s_mlp1),
        "w2": jax.random.uniform(keys[6], (hidden_dim, hidden_dim), jnp.float32, -s_mlp2, s_mlp2),
        "b2": jax.random.uniform(keys[7], (1, hidden_dim), jnp.float32, -s_mlp2, s_mlp2),
        "w3": jax.random.uniform(keys[8], (hidden_dim, num_labels), jnp.float32, -s_mlp2, s_mlp2),
        "b3": jax.random.uniform(keys[9], (1, num_labels), jnp.float32, -s_mlp2, s_mlp2),
    }
    return params


if __name__ == "__main__":
    # Small shapes consistent with the module.
    B, T = 2, 8
    vocab_size, E, H, hidden_dim, num_labels = 100, 16, 32, 64, 3

    key = jax.random.PRNGKey(0)
    pkey, k1, k2 = jax.random.split(key, 3)
    params = init_params(pkey, vocab_size, E, H, hidden_dim, num_labels)

    sentence1 = jax.random.randint(k1, (B, T), 0, vocab_size, jnp.int32)
    sentence2 = jax.random.randint(k2, (B, T), 0, vocab_size, jnp.int32)
    lengths1 = jnp.array([8, 5], dtype=jnp.int32)
    lengths2 = jnp.array([6, 3], dtype=jnp.int32)

    fwd = jax.jit(functools.partial(lstm_maxpool_nli_forward, t_blk=8))
    logits = fwd(params, sentence1, lengths1, sentence2, lengths2)
    jax.block_until_ready(logits)

    ref = _forward_ref(params, sentence1, lengths1, sentence2, lengths2)
    assert logits.shape == (B, num_labels), logits.shape
    assert jnp.allclose(logits, ref, rtol=2e-3, atol=2e-3), (logits, ref)

    print("KERNEL_OK")
</pallas_src>

<mosaic_0001>
module attributes {stable_mosaic.version = 11 : i64} {
  func.func @kernel(%arg0: i32, %arg1: memref<1xi32, #tpu.memory_space<smem>>, %arg2: memref<8x1xi32, #tpu.memory_space<vmem>>, %arg3: memref<8x1xf32, #tpu.memory_space<vmem>>, %arg4: memref<64x16xf32, #tpu.memory_space<vmem>>, %arg5: memref<16x128xf32, #tpu.memory_space<vmem>>, %arg6: memref<32x128xf32, #tpu.memory_space<vmem>>, %arg7: memref<1x128xf32, #tpu.memory_space<vmem>>, %arg8: memref<8x32xf32, #tpu.memory_space<vmem>>, %arg9: memref<8x32xf32, #tpu.memory_space<vmem>>, %arg10: memref<8x32xf32, #tpu.memory_space<vmem>>, %arg11: memref<8x32xf32, #tpu.memory_space<vmem>>) attributes {dimension_semantics = [#tpu.dimension_semantics<arbitrary>], iteration_bounds = array<i64: 1>, scalar_prefetch = 1 : i64, scratch_operands = 3 : i64, tpu.core_type = #tpu.core_type<tc>, window_params = [{pipeline_mode = #tpu.pipeline_mode<synchronous>, transform_indices = @transform_0, window_bounds = array<i64: 8, 1>}, {pipeline_mode = #tpu.pipeline_mode<synchronous>, transform_indices = @transform_1, window_bounds = array<i64: 8, 1>}, {transform_indices = @transform_2, window_bounds = array<i64: 64, 16>}, {pipeline_mode = #tpu.pipeline_mode<synchronous>, transform_indices = @transform_3, window_bounds = array<i64: 16, 128>}, {pipeline_mode = #tpu.pipeline_mode<synchronous>, transform_indices = @transform_4, window_bounds = array<i64: 32, 128>}, {pipeline_mode = #tpu.pipeline_mode<synchronous>, transform_indices = @transform_5, window_bounds = array<i64: 1, 128>}, {pipeline_mode = #tpu.pipeline_mode<synchronous>, transform_indices = @transform_6, window_bounds = array<i64: 8, 32>}]} {
    %c8_i32 = arith.constant 8 : i32
    %0 = arith.muli %arg0, %c8_i32 : i32
    %c0_i32 = arith.constant 0 : i32
    %1 = arith.cmpi eq, %arg0, %c0_i32 : i32
    %2 = arith.extui %1 : i1 to i32
    %c0_i32_0 = arith.constant 0 : i32
    %3 = arith.cmpi ne, %2, %c0_i32_0 : i32
    scf.if %3 {
      %cst = arith.constant 0.000000e+00 : f32
      %11 = vector.broadcast %cst : f32 to vector<8x32xf32>
      %c0_4 = arith.constant 0 : index
      %c0_5 = arith.constant 0 : index
      %12 = vector.load %arg9[%c0_4, %c0_5] : memref<8x32xf32, #tpu.memory_space<vmem>>, vector<8x32xf32>
      tpu.vector_store %arg9[%c0_4, %c0_5], %11 {strides = array<i32>} : memref<8x32xf32, #tpu.memory_space<vmem>>, vector<8x32xf32>,
      %cst_6 = arith.constant 0.000000e+00 : f32
      %13 = vector.broadcast %cst_6 : f32 to vector<8x32xf32>
      %c0_7 = arith.constant 0 : index
      %c0_8 = arith.constant 0 : index
      %14 = vector.load %arg10[%c0_7, %c0_8] : memref<8x32xf32, #tpu.memory_space<vmem>>, vector<8x32xf32>
      tpu.vector_store %arg10[%c0_7, %c0_8], %13 {strides = array<i32>} : memref<8x32xf32, #tpu.memory_space<vmem>>, vector<8x32xf32>,
      %c0_9 = arith.constant 0 : index
      %c0_10 = arith.constant 0 : index
      %15 = vector.load %arg3[%c0_9, %c0_10] : memref<8x1xf32, #tpu.memory_space<vmem>>, vector<8x1xf32>
      %16 = vector.shape_cast %15 : vector<8x1xf32> to vector<8x1xf32>
      %17 = vector.broadcast %16 : vector<8x1xf32> to vector<8x32xf32>
      %c0_11 = arith.constant 0 : index
      %c0_12 = arith.constant 0 : index
      %18 = vector.load %arg11[%c0_11, %c0_12] : memref<8x32xf32, #tpu.memory_space<vmem>>, vector<8x32xf32>
      tpu.vector_store %arg11[%c0_11, %c0_12], %17 {strides = array<i32>} : memref<8x32xf32, #tpu.memory_space<vmem>>, vector<8x32xf32>,
    } else {
    }
    %c0 = arith.constant 0 : index
    %4 = memref.load %arg1[%c0] : memref<1xi32, #tpu.memory_space<smem>>
    %5 = arith.cmpi slt, %0, %4 : i32
    %6 = arith.extui %5 : i1 to i32
    %c0_i32_1 = arith.constant 0 : i32
    %7 = arith.cmpi ne, %6, %c0_i32_1 : i32
    scf.if %7 {
      %c0_4 = arith.constant 0 : index
      %c0_5 = arith.constant 0 : index
      %11 = vector.load %arg4[%c0_4, %c0_5] : memref<64x16xf32, #tpu.memory_space<vmem>>, vector<64x16xf32>
      %c0_6 = arith.constant 0 : index
      %c0_7 = arith.constant 0 : index
      %12 = vector.load %arg5[%c0_6, %c0_7] : memref<16x128xf32, #tpu.memory_space<vmem>>, vector<16x128xf32>
      %cst = arith.constant dense<0.000000e+00> : vector<64x128xf32>
      %13 = tpu.matmul %11, %12, %cst {dimension_numbers = #tpu.dot_dimension_numbers<[1], [0], [0], [1], [0, 0, 1, 1], [], []>} : vector<64x16xf32>, vector<16x128xf32>, vector<64x128xf32> -> vector<64x128xf32>
      %c0_8 = arith.constant 0 : index
      %c0_9 = arith.constant 0 : index
      %14 = vector.load %arg7[%c0_8, %c0_9] : memref<1x128xf32, #tpu.memory_space<vmem>>, vector<1x128xf32>
      %15 = vector.broadcast %14 : vector<1x128xf32> to vector<64x128xf32>
      %16 = arith.addf %13, %15 : vector<64x128xf32>
      %c0_10 = arith.constant 0 : index
      %c0_11 = arith.constant 0 : index
      %17 = vector.load %arg2[%c0_10, %c0_11] : memref<8x1xi32, #tpu.memory_space<vmem>>, vector<8x1xi32>
      %c0_12 = arith.constant 0 : index
      %c0_13 = arith.constant 0 : index
      %18 = vector.load %arg9[%c0_12, %c0_13] : memref<8x32xf32, #tpu.memory_space<vmem>>, vector<8x32xf32>
      %c0_14 = arith.constant 0 : index
      %c0_15 = arith.constant 0 : index
      %19 = vector.load %arg10[%c0_14, %c0_15] : memref<8x32xf32, #tpu.memory_space<vmem>>, vector<8x32xf32>
      %c0_16 = arith.constant 0 : index
      %c0_17 = arith.constant 0 : index
      %20 = vector.load %arg11[%c0_16, %c0_17] : memref<8x32xf32, #tpu.memory_space<vmem>>, vector<8x32xf32>
      %21 = vector.extract_strided_slice %16 {offsets = [0, 0], sizes = [8, 128], strides = [1, 1]} : vector<64x128xf32> to vector<8x128xf32>
      %c0_18 = arith.constant 0 : index
      %c0_19 = arith.constant 0 : index
      %22 = vector.load %arg6[%c0_18, %c0_19] : memref<32x128xf32, #tpu.memory_space<vmem>>, vector<32x128xf32>
      %cst_20 = arith.constant dense<0.000000e+00> : vector<8x128xf32>
      %23 = tpu.matmul %18, %22, %cst_20 {dimension_numbers = #tpu.dot_dimension_numbers<[1], [0], [0], [1], [0, 0, 1, 1], [], []>} : vector<8x32xf32>, vector<32x128xf32>, vector<8x128xf32> -> vector<8x128xf32>
      %24 = arith.addf %21, %23 : vector<8x128xf32>
      %25 = vector.extract_strided_slice %24 {offsets = [0, 0], sizes = [8, 32], strides = [1, 1]} : vector<8x128xf32> to vector<8x32xf32>
      %26 = arith.negf %25 : vector<8x32xf32>
      %27 = math.exp %26 : vector<8x32xf32>
      %cst_21 = arith.constant 1.000000e+00 : f32
      %28 = vector.broadcast %cst_21 : f32 to vector<8x32xf32>
      %29 = arith.addf %28, %27 : vector<8x32xf32>
      %30 = arith.divf %28, %29 : vector<8x32xf32>
      %31 = vector.extract_strided_slice %24 {offsets = [0, 32], sizes = [8, 32], strides = [1, 1]} : vector<8x128xf32> to vector<8x32xf32>
      %32 = arith.negf %31 : vector<8x32xf32>
      %33 = math.exp %32 : vector<8x32xf32>
      %cst_22 = arith.constant 1.000000e+00 : f32
      %34 = vector.broadcast %cst_22 : f32 to vector<8x32xf32>
      %35 = arith.addf %34, %33 : vector<8x32xf32>
      %36 = arith.divf %34, %35 : vector<8x32xf32>
      %37 = vector.extract_strided_slice %24 {offsets = [0, 64], sizes = [8, 32], strides = [1, 1]} : vector<8x128xf32> to vector<8x32xf32>
      %38 = math.tanh %37 : vector<8x32xf32>
      %39 = vector.extract_strided_slice %24 {offsets = [0, 96], sizes = [8, 32], strides = [1, 1]} : vector<8x128xf32> to vector<8x32xf32>
      %40 = arith.negf %39 : vector<8x32xf32>
      %41 = math.exp %40 : vector<8x32xf32>
      %cst_23 = arith.constant 1.000000e+00 : f32
      %42 = vector.broadcast %cst_23 : f32 to vector<8x32xf32>
      %43 = arith.addf %42, %41 : vector<8x32xf32>
      %44 = arith.divf %42, %43 : vector<8x32xf32>
      %45 = arith.mulf %36, %19 : vector<8x32xf32>
      %46 = arith.mulf %30, %38 : vector<8x32xf32>
      %47 = arith.addf %45, %46 : vector<8x32xf32>
      %48 = math.tanh %47 : vector<8x32xf32>
      %49 = arith.mulf %44, %48 : vector<8x32xf32>
      %c0_i32_24 = arith.constant 0 : i32
      %50 = arith.addi %0, %c0_i32_24 : i32
      %51 = vector.broadcast %50 : i32 to vector<8x1xi32>
      %52 = arith.cmpi slt, %51, %17 : vector<8x1xi32>
      %53 = arith.maximumf %20, %49 : vector<8x32xf32>
      %54 = vector.shape_cast %52 : vector<8x1xi1> to vector<8x1xi1>
      %55 = vector.broadcast %54 : vector<8x1xi1> to vector<8x32xi1>
      %56 = arith.select %55, %53, %20 : vector<8x32xi1>, vector<8x32xf32>
      %57 = vector.extract_strided_slice %16 {offsets = [8, 0], sizes = [8, 128], strides = [1, 1]} : vector<64x128xf32> to vector<8x128xf32>
      %c0_25 = arith.constant 0 : index
      %c0_26 = arith.constant 0 : index
      %58 = vector.load %arg6[%c0_25, %c0_26] : memref<32x128xf32, #tpu.memory_space<vmem>>, vector<32x128xf32>
      %cst_27 = arith.constant dense<0.000000e+00> : vector<8x128xf32>
      %59 = tpu.matmul %49, %58, %cst_27 {dimension_numbers = #tpu.dot_dimension_numbers<[1], [0], [0], [1], [0, 0, 1, 1], [], []>} : vector<8x32xf32>, vector<32x128xf32>, vector<8x128xf32> -> vector<8x128xf32>
      %60 = arith.addf %57, %59 : vector<8x128xf32>
      %61 = vector.extract_strided_slice %60 {offsets = [0, 0], sizes = [8, 32], strides = [1, 1]} : vector<8x128xf32> to vector<8x32xf32>
      %62 = arith.negf %61 : vector<8x32xf32>
      %63 = math.exp %62 : vector<8x32xf32>
      %cst_28 = arith.constant 1.000000e+00 : f32
      %64 = vector.broadcast %cst_28 : f32 to vector<8x32xf32>
      %65 = arith.addf %64, %63 : vector<8x32xf32>
      %66 = arith.divf %64, %65 : vector<8x32xf32>
      %67 = vector.extract_strided_slice %60 {offsets = [0, 32], sizes = [8, 32], strides = [1, 1]} : vector<8x128xf32> to vector<8x32xf32>
      %68 = arith.negf %67 : vector<8x32xf32>
      %69 = math.exp %68 : vector<8x32xf32>
      %cst_29 = arith.constant 1.000000e+00 : f32
      %70 = vector.broadcast %cst_29 : f32 to vector<8x32xf32>
      %71 = arith.addf %70, %69 : vector<8x32xf32>
      %72 = arith.divf %70, %71 : vector<8x32xf32>
      %73 = vector.extract_strided_slice %60 {offsets = [0, 64], sizes = [8, 32], strides = [1, 1]} : vector<8x128xf32> to vector<8x32xf32>
      %74 = math.tanh %73 : vector<8x32xf32>
      %75 = vector.extract_strided_slice %60 {offsets = [0, 96], sizes = [8, 32], strides = [1, 1]} : vector<8x128xf32> to vector<8x32xf32>
      %76 = arith.negf %75 : vector<8x32xf32>
      %77 = math.exp %76 : vector<8x32xf32>
      %cst_30 = arith.constant 1.000000e+00 : f32
      %78 = vector.broadcast %cst_30 : f32 to vector<8x32xf32>
      %79 = arith.addf %78, %77 : vector<8x32xf32>
      %80 = arith.divf %78, %79 : vector<8x32xf32>
      %81 = arith.mulf %72, %47 : vector<8x32xf32>
      %82 = arith.mulf %66, %74 : vector<8x32xf32>
      %83 = arith.addf %81, %82 : vector<8x32xf32>
      %84 = math.tanh %83 : vector<8x32xf32>
      %85 = arith.mulf %80, %84 : vector<8x32xf32>
      %c1_i32 = arith.constant 1 : i32
      %86 = arith.addi %0, %c1_i32 : i32
      %87 = vector.broadcast %86 : i32 to vector<8x1xi32>
      %88 = arith.cmpi slt, %87, %17 : vector<8x1xi32>
      %89 = arith.maximumf %56, %85 : vector<8x32xf32>
      %90 = vector.shape_cast %88 : vector<8x1xi1> to vector<8x1xi1>
      %91 = vector.broadcast %90 : vector<8x1xi1> to vector<8x32xi1>
      %92 = arith.select %91, %89, %56 : vector<8x32xi1>, vector<8x32xf32>
      %93 = vector.extract_strided_slice %16 {offsets = [16, 0], sizes = [8, 128], strides = [1, 1]} : vector<64x128xf32> to vector<8x128xf32>
      %c0_31 = arith.constant 0 : index
      %c0_32 = arith.constant 0 : index
      %94 = vector.load %arg6[%c0_31, %c0_32] : memref<32x128xf32, #tpu.memory_space<vmem>>, vector<32x128xf32>
      %cst_33 = arith.constant dense<0.000000e+00> : vector<8x128xf32>
      %95 = tpu.matmul %85, %94, %cst_33 {dimension_numbers = #tpu.dot_dimension_numbers<[1], [0], [0], [1], [0, 0, 1, 1], [], []>} : vector<8x32xf32>, vector<32x128xf32>, vector<8x128xf32> -> vector<8x128xf32>
      %96 = arith.addf %93, %95 : vector<8x128xf32>
      %97 = vector.extract_strided_slice %96 {offsets = [0, 0], sizes = [8, 32], strides = [1, 1]} : vector<8x128xf32> to vector<8x32xf32>
      %98 = arith.negf %97 : vector<8x32xf32>
      %99 = math.exp %98 : vector<8x32xf32>
      %cst_34 = arith.constant 1.000000e+00 : f32
      %100 = vector.broadcast %cst_34 : f32 to vector<8x32xf32>
      %101 = arith.addf %100, %99 : vector<8x32xf32>
      %102 = arith.divf %100, %101 : vector<8x32xf32>
      %103 = vector.extract_strided_slice %96 {offsets = [0, 32], sizes = [8, 32], strides = [1, 1]} : vector<8x128xf32> to vector<8x32xf32>
      %104 = arith.negf %103 : vector<8x32xf32>
      %105 = math.exp %104 : vector<8x32xf32>
      %cst_35 = arith.constant 1.000000e+00 : f32
      %106 = vector.broadcast %cst_35 : f32 to vector<8x32xf32>
      %107 = arith.addf %106, %105 : vector<8x32xf32>
      %108 = arith.divf %106, %107 : vector<8x32xf32>
      %109 = vector.extract_strided_slice %96 {offsets = [0, 64], sizes = [8, 32], strides = [1, 1]} : vector<8x128xf32> to vector<8x32xf32>
      %110 = math.tanh %109 : vector<8x32xf32>
      %111 = vector.extract_strided_slice %96 {offsets = [0, 96], sizes = [8, 32], strides = [1, 1]} : vector<8x128xf32> to vector<8x32xf32>
      %112 = arith.negf %111 : vector<8x32xf32>
      %113 = math.exp %112 : vector<8x32xf32>
      %cst_36 = arith.constant 1.000000e+00 : f32
      %114 = vector.broadcast %cst_36 : f32 to vector<8x32xf32>
      %115 = arith.addf %114, %113 : vector<8x32xf32>
      %116 = arith.divf %114, %115 : vector<8x32xf32>
      %117 = arith.mulf %108, %83 : vector<8x32xf32>
      %118 = arith.mulf %102, %110 : vector<8x32xf32>
      %119 = arith.addf %117, %118 : vector<8x32xf32>
      %120 = math.tanh %119 : vector<8x32xf32>
      %121 = arith.mulf %116, %120 : vector<8x32xf32>
      %c2_i32 = arith.constant 2 : i32
      %122 = arith.addi %0, %c2_i32 : i32
      %123 = vector.broadcast %122 : i32 to vector<8x1xi32>
      %124 = arith.cmpi slt, %123, %17 : vector<8x1xi32>
      %125 = arith.maximumf %92, %121 : vector<8x32xf32>
      %126 = vector.shape_cast %124 : vector<8x1xi1> to vector<8x1xi1>
      %127 = vector.broadcast %126 : vector<8x1xi1> to vector<8x32xi1>
      %128 = arith.select %127, %125, %92 : vector<8x32xi1>, vector<8x32xf32>
      %129 = vector.extract_strided_slice %16 {offsets = [24, 0], sizes = [8, 128], strides = [1, 1]} : vector<64x128xf32> to vector<8x128xf32>
      %c0_37 = arith.constant 0 : index
      %c0_38 = arith.constant 0 : index
      %130 = vector.load %arg6[%c0_37, %c0_38] : memref<32x128xf32, #tpu.memory_space<vmem>>, vector<32x128xf32>
      %cst_39 = arith.constant dense<0.000000e+00> : vector<8x128xf32>
      %131 = tpu.matmul %121, %130, %cst_39 {dimension_numbers = #tpu.dot_dimension_numbers<[1], [0], [0], [1], [0, 0, 1, 1], [], []>} : vector<8x32xf32>, vector<32x128xf32>, vector<8x128xf32> -> vector<8x128xf32>
      %132 = arith.addf %129, %131 : vector<8x128xf32>
      %133 = vector.extract_strided_slice %132 {offsets = [0, 0], sizes = [8, 32], strides = [1, 1]} : vector<8x128xf32> to vector<8x32xf32>
      %134 = arith.negf %133 : vector<8x32xf32>
      %135 = math.exp %134 : vector<8x32xf32>
      %cst_40 = arith.constant 1.000000e+00 : f32
      %136 = vector.broadcast %cst_40 : f32 to vector<8x32xf32>
      %137 = arith.addf %136, %135 : vector<8x32xf32>
      %138 = arith.divf %136, %137 : vector<8x32xf32>
      %139 = vector.extract_strided_slice %132 {offsets = [0, 32], sizes = [8, 32], strides = [1, 1]} : vector<8x128xf32> to vector<8x32xf32>
      %140 = arith.negf %139 : vector<8x32xf32>
      %141 = math.exp %140 : vector<8x32xf32>
      %cst_41 = arith.constant 1.000000e+00 : f32
      %142 = vector.broadcast %cst_41 : f32 to vector<8x32xf32>
      %143 = arith.addf %142, %141 : vector<8x32xf32>
      %144 = arith.divf %142, %143 : vector<8x32xf32>
      %145 = vector.extract_strided_slice %132 {offsets = [0, 64], sizes = [8, 32], strides = [1, 1]} : vector<8x128xf32> to vector<8x32xf32>
      %146 = math.tanh %145 : vector<8x32xf32>
      %147 = vector.extract_strided_slice %132 {offsets = [0, 96], sizes = [8, 32], strides = [1, 1]} : vector<8x128xf32> to vector<8x32xf32>
      %148 = arith.negf %147 : vector<8x32xf32>
      %149 = math.exp %148 : vector<8x32xf32>
      %cst_42 = arith.constant 1.000000e+00 : f32
      %150 = vector.broadcast %cst_42 : f32 to vector<8x32xf32>
      %151 = arith.addf %150, %149 : vector<8x32xf32>
      %152 = arith.divf %150, %151 : vector<8x32xf32>
      %153 = arith.mulf %144, %119 : vector<8x32xf32>
      %154 = arith.mulf %138, %146 : vector<8x32xf32>
      %155 = arith.addf %153, %154 : vector<8x32xf32>
      %156 = math.tanh %155 : vector<8x32xf32>
      %157 = arith.mulf %152, %156 : vector<8x32xf32>
      %c3_i32 = arith.constant 3 : i32
      %158 = arith.addi %0, %c3_i32 : i32
      %159 = vector.broadcast %158 : i32 to vector<8x1xi32>
      %160 = arith.cmpi slt, %159, %17 : vector<8x1xi32>
      %161 = arith.maximumf %128, %157 : vector<8x32xf32>
      %162 = vector.shape_cast %160 : vector<8x1xi1> to vector<8x1xi1>
      %163 = vector.broadcast %162 : vector<8x1xi1> to vector<8x32xi1>
      %164 = arith.select %163, %161, %128 : vector<8x32xi1>, vector<8x32xf32>
      %165 = vector.extract_strided_slice %16 {offsets = [32, 0], sizes = [8, 128], strides = [1, 1]} : vector<64x128xf32> to vector<8x128xf32>
      %c0_43 = arith.constant 0 : index
      %c0_44 = arith.constant 0 : index
      %166 = vector.load %arg6[%c0_43, %c0_44] : memref<32x128xf32, #tpu.memory_space<vmem>>, vector<32x128xf32>
      %cst_45 = arith.constant dense<0.000000e+00> : vector<8x128xf32>
      %167 = tpu.matmul %157, %166, %cst_45 {dimension_numbers = #tpu.dot_dimension_numbers<[1], [0], [0], [1], [0, 0, 1, 1], [], []>} : vector<8x32xf32>, vector<32x128xf32>, vector<8x128xf32> -> vector<8x128xf32>
      %168 = arith.addf %165, %167 : vector<8x128xf32>
      %169 = vector.extract_strided_slice %168 {offsets = [0, 0], sizes = [8, 32], strides = [1, 1]} : vector<8x128xf32> to vector<8x32xf32>
      %170 = arith.negf %169 : vector<8x32xf32>
      %171 = math.exp %170 : vector<8x32xf32>
      %cst_46 = arith.constant 1.000000e+00 : f32
      %172 = vector.broadcast %cst_46 : f32 to vector<8x32xf32>
      %173 = arith.addf %172, %171 : vector<8x32xf32>
      %174 = arith.divf %172, %173 : vector<8x32xf32>
      %175 = vector.extract_strided_slice %168 {offsets = [0, 32], sizes = [8, 32], strides = [1, 1]} : vector<8x128xf32> to vector<8x32xf32>
      %176 = arith.negf %175 : vector<8x32xf32>
      %177 = math.exp %176 : vector<8x32xf32>
      %cst_47 = arith.constant 1.000000e+00 : f32
      %178 = vector.broadcast %cst_47 : f32 to vector<8x32xf32>
      %179 = arith.addf %178, %177 : vector<8x32xf32>
      %180 = arith.divf %178, %179 : vector<8x32xf32>
      %181 = vector.extract_strided_slice %168 {offsets = [0, 64], sizes = [8, 32], strides = [1, 1]} : vector<8x128xf32> to vector<8x32xf32>
      %182 = math.tanh %181 : vector<8x32xf32>
      %183 = vector.extract_strided_slice %168 {offsets = [0, 96], sizes = [8, 32], strides = [1, 1]} : vector<8x128xf32> to vector<8x32xf32>
      %184 = arith.negf %183 : vector<8x32xf32>
      %185 = math.exp %184 : vector<8x32xf32>
      %cst_48 = arith.constant 1.000000e+00 : f32
      %186 = vector.broadcast %cst_48 : f32 to vector<8x32xf32>
      %187 = arith.addf %186, %185 : vector<8x32xf32>
      %188 = arith.divf %186, %187 : vector<8x32xf32>
      %189 = arith.mulf %180, %155 : vector<8x32xf32>
      %190 = arith.mulf %174, %182 : vector<8x32xf32>
      %191 = arith.addf %189, %190 : vector<8x32xf32>
      %192 = math.tanh %191 : vector<8x32xf32>
      %193 = arith.mulf %188, %192 : vector<8x32xf32>
      %c4_i32 = arith.constant 4 : i32
      %194 = arith.addi %0, %c4_i32 : i32
      %195 = vector.broadcast %194 : i32 to vector<8x1xi32>
      %196 = arith.cmpi slt, %195, %17 : vector<8x1xi32>
      %197 = arith.maximumf %164, %193 : vector<8x32xf32>
      %198 = vector.shape_cast %196 : vector<8x1xi1> to vector<8x1xi1>
      %199 = vector.broadcast %198 : vector<8x1xi1> to vector<8x32xi1>
      %200 = arith.select %199, %197, %164 : vector<8x32xi1>, vector<8x32xf32>
      %201 = vector.extract_strided_slice %16 {offsets = [40, 0], sizes = [8, 128], strides = [1, 1]} : vector<64x128xf32> to vector<8x128xf32>
      %c0_49 = arith.constant 0 : index
      %c0_50 = arith.constant 0 : index
      %202 = vector.load %arg6[%c0_49, %c0_50] : memref<32x128xf32, #tpu.memory_space<vmem>>, vector<32x128xf32>
      %cst_51 = arith.constant dense<0.000000e+00> : vector<8x128xf32>
      %203 = tpu.matmul %193, %202, %cst_51 {dimension_numbers = #tpu.dot_dimension_numbers<[1], [0], [0], [1], [0, 0, 1, 1], [], []>} : vector<8x32xf32>, vector<32x128xf32>, vector<8x128xf32> -> vector<8x128xf32>
      %204 = arith.addf %201, %203 : vector<8x128xf32>
      %205 = vector.extract_strided_slice %204 {offsets = [0, 0], sizes = [8, 32], strides = [1, 1]} : vector<8x128xf32> to vector<8x32xf32>
      %206 = arith.negf %205 : vector<8x32xf32>
      %207 = math.exp %206 : vector<8x32xf32>
      %cst_52 = arith.constant 1.000000e+00 : f32
      %208 = vector.broadcast %cst_52 : f32 to vector<8x32xf32>
      %209 = arith.addf %208, %207 : vector<8x32xf32>
      %210 = arith.divf %208, %209 : vector<8x32xf32>
      %211 = vector.extract_strided_slice %204 {offsets = [0, 32], sizes = [8, 32], strides = [1, 1]} : vector<8x128xf32> to vector<8x32xf32>
      %212 = arith.negf %211 : vector<8x32xf32>
      %213 = math.exp %212 : vector<8x32xf32>
      %cst_53 = arith.constant 1.000000e+00 : f32
      %214 = vector.broadcast %cst_53 : f32 to vector<8x32xf32>
      %215 = arith.addf %214, %213 : vector<8x32xf32>
      %216 = arith.divf %214, %215 : vector<8x32xf32>
      %217 = vector.extract_strided_slice %204 {offsets = [0, 64], sizes = [8, 32], strides = [1, 1]} : vector<8x128xf32> to vector<8x32xf32>
      %218 = math.tanh %217 : vector<8x32xf32>
      %219 = vector.extract_strided_slice %204 {offsets = [0, 96], sizes = [8, 32], strides = [1, 1]} : vector<8x128xf32> to vector<8x32xf32>
      %220 = arith.negf %219 : vector<8x32xf32>
      %221 = math.exp %220 : vector<8x32xf32>
      %cst_54 = arith.constant 1.000000e+00 : f32
      %222 = vector.broadcast %cst_54 : f32 to vector<8x32xf32>
      %223 = arith.addf %222, %221 : vector<8x32xf32>
      %224 = arith.divf %222, %223 : vector<8x32xf32>
      %225 = arith.mulf %216, %191 : vector<8x32xf32>
      %226 = arith.mulf %210, %218 : vector<8x32xf32>
      %227 = arith.addf %225, %226 : vector<8x32xf32>
      %228 = math.tanh %227 : vector<8x32xf32>
      %229 = arith.mulf %224, %228 : vector<8x32xf32>
      %c5_i32 = arith.constant 5 : i32
      %230 = arith.addi %0, %c5_i32 : i32
      %231 = vector.broadcast %230 : i32 to vector<8x1xi32>
      %232 = arith.cmpi slt, %231, %17 : vector<8x1xi32>
      %233 = arith.maximumf %200, %229 : vector<8x32xf32>
      %234 = vector.shape_cast %232 : vector<8x1xi1> to vector<8x1xi1>
      %235 = vector.broadcast %234 : vector<8x1xi1> to vector<8x32xi1>
      %236 = arith.select %235, %233, %200 : vector<8x32xi1>, vector<8x32xf32>
      %237 = vector.extract_strided_slice %16 {offsets = [48, 0], sizes = [8, 128], strides = [1, 1]} : vector<64x128xf32> to vector<8x128xf32>
      %c0_55 = arith.constant 0 : index
      %c0_56 = arith.constant 0 : index
      %238 = vector.load %arg6[%c0_55, %c0_56] : memref<32x128xf32, #tpu.memory_space<vmem>>, vector<32x128xf32>
      %cst_57 = arith.constant dense<0.000000e+00> : vector<8x128xf32>
      %239 = tpu.matmul %229, %238, %cst_57 {dimension_numbers = #tpu.dot_dimension_numbers<[1], [0], [0], [1], [0, 0, 1, 1], [], []>} : vector<8x32xf32>, vector<32x128xf32>, vector<8x128xf32> -> vector<8x128xf32>
      %240 = arith.addf %237, %239 : vector<8x128xf32>
      %241 = vector.extract_strided_slice %240 {offsets = [0, 0], sizes = [8, 32], strides = [1, 1]} : vector<8x128xf32> to vector<8x32xf32>
      %242 = arith.negf %241 : vector<8x32xf32>
      %243 = math.exp %242 : vector<8x32xf32>
      %cst_58 = arith.constant 1.000000e+00 : f32
      %244 = vector.broadcast %cst_58 : f32 to vector<8x32xf32>
      %245 = arith.addf %244, %243 : vector<8x32xf32>
      %246 = arith.divf %244, %245 : vector<8x32xf32>
      %247 = vector.extract_strided_slice %240 {offsets = [0, 32], sizes = [8, 32], strides = [1, 1]} : vector<8x128xf32> to vector<8x32xf32>
      %248 = arith.negf %247 : vector<8x32xf32>
      %249 = math.exp %248 : vector<8x32xf32>
      %cst_59 = arith.constant 1.000000e+00 : f32
      %250 = vector.broadcast %cst_59 : f32 to vector<8x32xf32>
      %251 = arith.addf %250, %249 : vector<8x32xf32>
      %252 = arith.divf %250, %251 : vector<8x32xf32>
      %253 = vector.extract_strided_slice %240 {offsets = [0, 64], sizes = [8, 32], strides = [1, 1]} : vector<8x128xf32> to vector<8x32xf32>
      %254 = math.tanh %253 : vector<8x32xf32>
      %255 = vector.extract_strided_slice %240 {offsets = [0, 96], sizes = [8, 32], strides = [1, 1]} : vector<8x128xf32> to vector<8x32xf32>
      %256 = arith.negf %255 : vector<8x32xf32>
      %257 = math.exp %256 : vector<8x32xf32>
      %cst_60 = arith.constant 1.000000e+00 : f32
      %258 = vector.broadcast %cst_60 : f32 to vector<8x32xf32>
      %259 = arith.addf %258, %257 : vector<8x32xf32>
      %260 = arith.divf %258, %259 : vector<8x32xf32>
      %261 = arith.mulf %252, %227 : vector<8x32xf32>
      %262 = arith.mulf %246, %254 : vector<8x32xf32>
      %263 = arith.addf %261, %262 : vector<8x32xf32>
      %264 = math.tanh %263 : vector<8x32xf32>
      %265 = arith.mulf %260, %264 : vector<8x32xf32>
      %c6_i32 = arith.constant 6 : i32
      %266 = arith.addi %0, %c6_i32 : i32
      %267 = vector.broadcast %266 : i32 to vector<8x1xi32>
      %268 = arith.cmpi slt, %267, %17 : vector<8x1xi32>
      %269 = arith.maximumf %236, %265 : vector<8x32xf32>
      %270 = vector.shape_cast %268 : vector<8x1xi1> to vector<8x1xi1>
      %271 = vector.broadcast %270 : vector<8x1xi1> to vector<8x32xi1>
      %272 = arith.select %271, %269, %236 : vector<8x32xi1>, vector<8x32xf32>
      %273 = vector.extract_strided_slice %16 {offsets = [56, 0], sizes = [8, 128], strides = [1, 1]} : vector<64x128xf32> to vector<8x128xf32>
      %c0_61 = arith.constant 0 : index
      %c0_62 = arith.constant 0 : index
      %274 = vector.load %arg6[%c0_61, %c0_62] : memref<32x128xf32, #tpu.memory_space<vmem>>, vector<32x128xf32>
      %cst_63 = arith.constant dense<0.000000e+00> : vector<8x128xf32>
      %275 = tpu.matmul %265, %274, %cst_63 {dimension_numbers = #tpu.dot_dimension_numbers<[1], [0], [0], [1], [0, 0, 1, 1], [], []>} : vector<8x32xf32>, vector<32x128xf32>, vector<8x128xf32> -> vector<8x128xf32>
      %276 = arith.addf %273, %275 : vector<8x128xf32>
      %277 = vector.extract_strided_slice %276 {offsets = [0, 0], sizes = [8, 32], strides = [1, 1]} : vector<8x128xf32> to vector<8x32xf32>
      %278 = arith.negf %277 : vector<8x32xf32>
      %279 = math.exp %278 : vector<8x32xf32>
      %cst_64 = arith.constant 1.000000e+00 : f32
      %280 = vector.broadcast %cst_64 : f32 to vector<8x32xf32>
      %281 = arith.addf %280, %279 : vector<8x32xf32>
      %282 = arith.divf %280, %281 : vector<8x32xf32>
      %283 = vector.extract_strided_slice %276 {offsets = [0, 32], sizes = [8, 32], strides = [1, 1]} : vector<8x128xf32> to vector<8x32xf32>
      %284 = arith.negf %283 : vector<8x32xf32>
      %285 = math.exp %284 : vector<8x32xf32>
      %cst_65 = arith.constant 1.000000e+00 : f32
      %286 = vector.broadcast %cst_65 : f32 to vector<8x32xf32>
      %287 = arith.addf %286, %285 : vector<8x32xf32>
      %288 = arith.divf %286, %287 : vector<8x32xf32>
      %289 = vector.extract_strided_slice %276 {offsets = [0, 64], sizes = [8, 32], strides = [1, 1]} : vector<8x128xf32> to vector<8x32xf32>
      %290 = math.tanh %289 : vector<8x32xf32>
      %291 = vector.extract_strided_slice %276 {offsets = [0, 96], sizes = [8, 32], strides = [1, 1]} : vector<8x128xf32> to vector<8x32xf32>
      %292 = arith.negf %291 : vector<8x32xf32>
      %293 = math.exp %292 : vector<8x32xf32>
      %cst_66 = arith.constant 1.000000e+00 : f32
      %294 = vector.broadcast %cst_66 : f32 to vector<8x32xf32>
      %295 = arith.addf %294, %293 : vector<8x32xf32>
      %296 = arith.divf %294, %295 : vector<8x32xf32>
      %297 = arith.mulf %288, %263 : vector<8x32xf32>
      %298 = arith.mulf %282, %290 : vector<8x32xf32>
      %299 = arith.addf %297, %298 : vector<8x32xf32>
      %300 = math.tanh %299 : vector<8x32xf32>
      %301 = arith.mulf %296, %300 : vector<8x32xf32>
      %c7_i32 = arith.constant 7 : i32
      %302 = arith.addi %0, %c7_i32 : i32
      %303 = vector.broadcast %302 : i32 to vector<8x1xi32>
      %304 = arith.cmpi slt, %303, %17 : vector<8x1xi32>
      %305 = arith.maximumf %272, %301 : vector<8x32xf32>
      %306 = vector.shape_cast %304 : vector<8x1xi1> to vector<8x1xi1>
      %307 = vector.broadcast %306 : vector<8x1xi1> to vector<8x32xi1>
      %308 = arith.select %307, %305, %272 : vector<8x32xi1>, vector<8x32xf32>
      %c0_67 = arith.constant 0 : index
      %c0_68 = arith.constant 0 : index
      %309 = vector.load %arg9[%c0_67, %c0_68] : memref<8x32xf32, #tpu.memory_space<vmem>>, vector<8x32xf32>
      tpu.vector_store %arg9[%c0_67, %c0_68], %301 {strides = array<i32>} : memref<8x32xf32, #tpu.memory_space<vmem>>, vector<8x32xf32>,
      %c0_69 = arith.constant 0 : index
      %c0_70 = arith.constant 0 : index
      %310 = vector.load %arg10[%c0_69, %c0_70] : memref<8x32xf32, #tpu.memory_space<vmem>>, vector<8x32xf32>
      tpu.vector_store %arg10[%c0_69, %c0_70], %299 {strides = array<i32>} : memref<8x32xf32, #tpu.memory_space<vmem>>, vector<8x32xf32>,
      %c0_71 = arith.constant 0 : index
      %c0_72 = arith.constant 0 : index
      %311 = vector.load %arg11[%c0_71, %c0_72] : memref<8x32xf32, #tpu.memory_space<vmem>>, vector<8x32xf32>
      tpu.vector_store %arg11[%c0_71, %c0_72], %308 {strides = array<i32>} : memref<8x32xf32, #tpu.memory_space<vmem>>, vector<8x32xf32>,
    } else {
    }
    %c0_i32_2 = arith.constant 0 : i32
    %8 = arith.cmpi eq, %arg0, %c0_i32_2 : i32
    %9 = arith.extui %8 : i1 to i32
    %c0_i32_3 = arith.constant 0 : i32
    %10 = arith.cmpi ne, %9, %c0_i32_3 : i32
    scf.if %10 {
      %c0_4 = arith.constant 0 : index
      %c0_5 = arith.constant 0 : index
      %11 = vector.load %arg11[%c0_4, %c0_5] : memref<8x32xf32, #tpu.memory_space<vmem>>, vector<8x32xf32>
      %c0_6 = arith.constant 0 : index
      %c0_7 = arith.constant 0 : index
      %12 = vector.load %arg8[%c0_6, %c0_7] : memref<8x32xf32, #tpu.memory_space<vmem>>, vector<8x32xf32>
      tpu.vector_store %arg8[%c0_6, %c0_7], %11 {strides = array<i32>} : memref<8x32xf32, #tpu.memory_space<vmem>>, vector<8x32xf32>,
    } else {
    }
    return
  }
  func.func @transform_0(%arg0: i32, %arg1: memref<1xi32, #tpu.memory_space<smem>>) -> (i32, i32) {
    %c0_i32 = arith.constant 0 : i32
    %c0_i32_0 = arith.constant 0 : i32
    %c0_i32_1 = arith.constant 0 : i32
    return %c0_i32, %c0_i32_0 : i32, i32
  }
  func.func @transform_1(%arg0: i32, %arg1: memref<1xi32, #tpu.memory_space<smem>>) -> (i32, i32) {
    %c0_i32 = arith.constant 0 : i32
    %c0_i32_0 = arith.constant 0 : i32
    %c0_i32_1 = arith.constant 0 : i32
    return %c0_i32, %c0_i32_0 : i32, i32
  }
  func.func @transform_2(%arg0: i32, %arg1: memref<1xi32, #tpu.memory_space<smem>>) -> (i32, i32) {
    %c0_i32 = arith.constant 0 : i32
    %c0_i32_0 = arith.constant 0 : i32
    return %arg0, %c0_i32 : i32, i32
  }
  func.func @transform_3(%arg0: i32, %arg1: memref<1xi32, #tpu.memory_space<smem>>) -> (i32, i32) {
    %c0_i32 = arith.constant 0 : i32
    %c0_i32_0 = arith.constant 0 : i32
    %c0_i32_1 = arith.constant 0 : i32
    return %c0_i32, %c0_i32_0 : i32, i32
  }
  func.func @transform_4(%arg0: i32, %arg1: memref<1xi32, #tpu.memory_space<smem>>) -> (i32, i32) {
    %c0_i32 = arith.constant 0 : i32
    %c0_i32_0 = arith.constant 0 : i32
    %c0_i32_1 = arith.constant 0 : i32
    return %c0_i32, %c0_i32_0 : i32, i32
  }
  func.func @transform_5(%arg0: i32, %arg1: memref<1xi32, #tpu.memory_space<smem>>) -> (i32, i32) {
    %c0_i32 = arith.constant 0 : i32
    %c0_i32_0 = arith.constant 0 : i32
    %c0_i32_1 = arith.constant 0 : i32
    return %c0_i32, %c0_i32_0 : i32, i32
  }
  func.func @transform_6(%arg0: i32, %arg1: memref<1xi32, #tpu.memory_space<smem>>) -> (i32, i32) {
    %c0_i32 = arith.constant 0 : i32
    %c0_i32_0 = arith.constant 0 : i32
    %c0_i32_1 = arith.constant 0 : i32
    return %c0_i32, %c0_i32_0 : i32, i32
  }
}

module attributes {stable_mosaic.version = 11 : i64} {
  func.func @mlp_kernel(%arg0: memref<2x32xf32, #tpu.memory_space<vmem>>, %arg1: memref<2x32xf32, #tpu.memory_space<vmem>>, %arg2: memref<4x32x64xf32, #tpu.memory_space<vmem>>, %arg3: memref<1x64xf32, #tpu.memory_space<vmem>>, %arg4: memref<64x64xf32, #tpu.memory_space<vmem>>, %arg5: memref<1x64xf32, #tpu.memory_space<vmem>>, %arg6: memref<64x128xf32, #tpu.memory_space<vmem>>, %arg7: memref<1x128xf32, #tpu.memory_space<vmem>>, %arg8: memref<2x128xf32, #tpu.memory_space<vmem>>) attributes {dimension_semantics = [], scalar_prefetch = 0 : i64, scratch_operands = 0 : i64, tpu.core_type = #tpu.core_type<tc>} {
    %c0 = arith.constant 0 : index
    %c0_0 = arith.constant 0 : index
    %0 = vector.load %arg0[%c0, %c0_0] : memref<2x32xf32, #tpu.memory_space<vmem>>, vector<2x32xf32>
    %c0_1 = arith.constant 0 : index
    %c0_2 = arith.constant 0 : index
    %1 = vector.load %arg1[%c0_1, %c0_2] : memref<2x32xf32, #tpu.memory_space<vmem>>, vector<2x32xf32>
    %2 = arith.subf %0, %1 : vector<2x32xf32>
    %3 = math.absf %2 : vector<2x32xf32>
    %4 = arith.mulf %0, %1 : vector<2x32xf32>
    %c0_3 = arith.constant 0 : index
    %c0_4 = arith.constant 0 : index
    %c0_5 = arith.constant 0 : index
    %5 = vector.load %arg2[%c0_3, %c0_4, %c0_5] : memref<4x32x64xf32, #tpu.memory_space<vmem>>, vector<1x32x64xf32>
    %6 = vector.shape_cast %5 : vector<1x32x64xf32> to vector<32x64xf32>
    %cst = arith.constant dense<0.000000e+00> : vector<2x64xf32>
    %7 = tpu.matmul %0, %6, %cst {dimension_numbers = #tpu.dot_dimension_numbers<[1], [0], [0], [1], [0, 0, 1, 1], [], []>} : vector<2x32xf32>, vector<32x64xf32>, vector<2x64xf32> -> vector<2x64xf32>
    %c1 = arith.constant 1 : index
    %c0_6 = arith.constant 0 : index
    %c0_7 = arith.constant 0 : index
    %8 = vector.load %arg2[%c1, %c0_6, %c0_7] : memref<4x32x64xf32, #tpu.memory_space<vmem>>, vector<1x32x64xf32>
    %9 = vector.shape_cast %8 : vector<1x32x64xf32> to vector<32x64xf32>
    %cst_8 = arith.constant dense<0.000000e+00> : vector<2x64xf32>
    %10 = tpu.matmul %1, %9, %cst_8 {dimension_numbers = #tpu.dot_dimension_numbers<[1], [0], [0], [1], [0, 0, 1, 1], [], []>} : vector<2x32xf32>, vector<32x64xf32>, vector<2x64xf32> -> vector<2x64xf32>
    %11 = arith.addf %7, %10 : vector<2x64xf32>
    %c2 = arith.constant 2 : index
    %c0_9 = arith.constant 0 : index
    %c0_10 = arith.constant 0 : index
    %12 = vector.load %arg2[%c2, %c0_9, %c0_10] : memref<4x32x64xf32, #tpu.memory_space<vmem>>, vector<1x32x64xf32>
    %13 = vector.shape_cast %12 : vector<1x32x64xf32> to vector<32x64xf32>
    %cst_11 = arith.constant dense<0.000000e+00> : vector<2x64xf32>
    %14 = tpu.matmul %3, %13, %cst_11 {dimension_numbers = #tpu.dot_dimension_numbers<[1], [0], [0], [1], [0, 0, 1, 1], [], []>} : vector<2x32xf32>, vector<32x64xf32>, vector<2x64xf32> -> vector<2x64xf32>
    %15 = arith.addf %11, %14 : vector<2x64xf32>
    %c3 = arith.constant 3 : index
    %c0_12 = arith.constant 0 : index
    %c0_13 = arith.constant 0 : index
    %16 = vector.load %arg2[%c3, %c0_12, %c0_13] : memref<4x32x64xf32, #tpu.memory_space<vmem>>, vector<1x32x64xf32>
    %17 = vector.shape_cast %16 : vector<1x32x64xf32> to vector<32x64xf32>
    %cst_14 = arith.constant dense<0.000000e+00> : vector<2x64xf32>
    %18 = tpu.matmul %4, %17, %cst_14 {dimension_numbers = #tpu.dot_dimension_numbers<[1], [0], [0], [1], [0, 0, 1, 1], [], []>} : vector<2x32xf32>, vector<32x64xf32>, vector<2x64xf32> -> vector<2x64xf32>
    %19 = arith.addf %15, %18 : vector<2x64xf32>
    %c0_15 = arith.constant 0 : index
    %c0_16 = arith.constant 0 : index
    %20 = vector.load %arg3[%c0_15, %c0_16] : memref<1x64xf32, #tpu.memory_space<vmem>>, vector<1x64xf32>
    %21 = vector.broadcast %20 : vector<1x64xf32> to vector<2x64xf32>
    %22 = arith.addf %19, %21 : vector<2x64xf32>
    %c0_17 = arith.constant 0 : index
    %c0_18 = arith.constant 0 : index
    %23 = vector.load %arg4[%c0_17, %c0_18] : memref<64x64xf32, #tpu.memory_space<vmem>>, vector<64x64xf32>
    %cst_19 = arith.constant dense<0.000000e+00> : vector<2x64xf32>
    %24 = tpu.matmul %22, %23, %cst_19 {dimension_numbers = #tpu.dot_dimension_numbers<[1], [0], [0], [1], [0, 0, 1, 1], [], []>} : vector<2x64xf32>, vector<64x64xf32>, vector<2x64xf32> -> vector<2x64xf32>
    %c0_20 = arith.constant 0 : index
    %c0_21 = arith.constant 0 : index
    %25 = vector.load %arg5[%c0_20, %c0_21] : memref<1x64xf32, #tpu.memory_space<vmem>>, vector<1x64xf32>
    %26 = vector.broadcast %25 : vector<1x64xf32> to vector<2x64xf32>
    %27 = arith.addf %24, %26 : vector<2x64xf32>
    %c0_22 = arith.constant 0 : index
    %c0_23 = arith.constant 0 : index
    %28 = vector.load %arg6[%c0_22, %c0_23] : memref<64x128xf32, #tpu.memory_space<vmem>>, vector<64x128xf32>
    %cst_24 = arith.constant dense<0.000000e+00> : vector<2x128xf32>
    %29 = tpu.matmul %27, %28, %cst_24 {dimension_numbers = #tpu.dot_dimension_numbers<[1], [0], [0], [1], [0, 0, 1, 1], [], []>} : vector<2x64xf32>, vector<64x128xf32>, vector<2x128xf32> -> vector<2x128xf32>
    %c0_25 = arith.constant 0 : index
    %c0_26 = arith.constant 0 : index
    %30 = vector.load %arg7[%c0_25, %c0_26] : memref<1x128xf32, #tpu.memory_space<vmem>>, vector<1x128xf32>
    %31 = vector.broadcast %30 : vector<1x128xf32> to vector<2x128xf32>
    %32 = arith.addf %29, %31 : vector<2x128xf32>
    %c0_27 = arith.constant 0 : index
    %c0_28 = arith.constant 0 : index
    %33 = vector.load %arg8[%c0_27, %c0_28] : memref<2x128xf32, #tpu.memory_space<vmem>>, vector<2x128xf32>
    tpu.vector_store %arg8[%c0_27, %c0_28], %32 {strides = array<i32>} : memref<2x128xf32, #tpu.memory_space<vmem>>, vector<2x128xf32>,
    return
  }
}

</mosaic_0001>

<bundles_post_ra>
// kernel: lstm_maxpool_nli_forward.3
= control target key start
LH: loop header
LB: loop body
LE: loop exit
PB: predicated region body
PF: predicated region fallthrough
CT: control target
= control target key end

     0   :  { %v766_v3 = vmov 0.0|0.0   ;;  %vm767_vm0 = vmmov 0   ;;  %v768_v11 = vmov 0.0   ;;  %s964_s0 = inlined_call_operand.vmem [shape: f32[2,32], index: 0, kind: input, shape index: {}]   ;;  %s965_s1 = inlined_call_operand.vmem [shape: f32[2,32], index: 1, kind: input, shape index: {}]   ;;  %s966_s2 = inlined_call_operand.vmem [shape: f32[4,32,64], index: 2, kind: input, shape index: {}]   ;;  %s967_s3 = inlined_call_operand.vmem [shape: f32[1,64], index: 3, kind: input, shape index: {}]   ;;  %s968_s4 = inlined_call_operand.vmem [shape: f32[64,64], index: 4, kind: input, shape index: {}]   ;;  %s969_s5 = inlined_call_operand.vmem [shape: f32[1,64], index: 5, kind: input, shape index: {}]   ;;  %s970_s6 = inlined_call_operand.vmem [shape: f32[64,128], index: 6, kind: input, shape index: {}]   ;;  %s971_s7 = inlined_call_operand.vmem [shape: f32[1,128], index: 7, kind: input, shape index: {}]   ;;  %s972_s8 = inlined_call_operand.hbm [shape: f32[2,128], index: 8, kind: output, shape index: {}]  }
   0x1   :  { %v549_v0 = vld [vmem:[%s966_s2 + $0x20] sm:$0xff]  ;;  %v550_v1 = vld [vmem:[%s966_s2 + $0x28] sm:$0xff]  ;;  %690 = vmatprep.subr.bf16.mxu0 %v766_v3  ;;  %696 = vmatprep.subr.bf16.mxu1 %v766_v3  ;;  %v551_v6 = vld [vmem:[%s966_s2 + $0x30] sm:$0xff] }
   0x2   :  { %v35_v2 = vld [vmem:[%s966_s2] sm:$0xff]  ;;  %v691_v4 = vpack.c.bf16 %v550_v1, %v549_v0  ;;  %v36_v5 = vld [vmem:[%s966_s2 + $0x8] sm:$0xff]  ;;  %v552_v7 = vld [vmem:[%s966_s2 + $0x38] sm:$0xff]  ;;  %616 = vmatprep.mubr.msk.f32.mxu0 %vm767_vm0, %v768_v11  ;;  %627 = vmatprep.mubr.msk.f32.mxu1 %vm767_vm0, %v768_v11 }
   0x3   :  { %v697_v8 = vpack.c.bf16 %v36_v5, %v35_v2  ;;  %v37_v9 = vld [vmem:[%s966_s2 + $0x10] sm:$0xff]  ;;  %v38_v10 = vld [vmem:[%s966_s2 + $0x18] sm:$0xff]  ;;  %v694_v12 = vpack.c.bf16 %v552_v7, %v551_v6  ;;  %v555_v14 = vld [vmem:[%s966_s2 + $0x40] sm:$0xff] }
   0x4   :  { %692 = vmatpush3.bf16.msra.mxu0 %v691_v4  ;;  %v700_v13 = vpack.c.bf16 %v38_v10, %v37_v9  ;;  %v556_v15 = vld [vmem:[%s966_s2 + $0x48] sm:$0xff]  ;;  %v560_v16 = vld [vmem:[%s966_s2 + $0x60] sm:$0xff] }
   0x5   :  { %698 = vmatpush3.bf16.msra.mxu1 %v697_v8  ;;  %693 = vmatprep.subr.bf16.mxu0 %v766_v3  ;;  %v561_v17 = vld [vmem:[%s966_s2 + $0x68] sm:$0xff] }
   0x6   :  { %699 = vmatprep.subr.bf16.mxu1 %v766_v3 }
   0x7   :  { %13 = vsyncpa [#allocation3], 0  ;;  %v31_v18 = vld [vmem:[%s965_s1] sm:$0x3]  ;;  %vm44_vm1 = vcmask 261120   ;;  %v703_v19 = vpack.c.bf16 %v556_v15, %v555_v14  ;;  %v709_v21 = vpack.c.bf16 %v561_v17, %v560_v16  ;;  %v557_v22 = vld [vmem:[%s966_s2 + $0x50] sm:$0xff] }
   0x8   :  { %695 = vmatpush3.bf16.msra.mxu0 %v694_v12  ;;  %v30_v20 = vld [vmem:[%s964_s0] sm:$0x3]  ;;  %v558_v23 = vld [vmem:[%s966_s2 + $0x58] sm:$0xff]  ;;  %v562_v24 = vld [vmem:[%s966_s2 + $0x70] sm:$0xff]  ;;  %vm372_vm2 = vcmask 523264   ;;  %s769_s27 = smov [#allocation2]  }
   0x9   :  { %701 = vmatpush3.bf16.msra.mxu1 %v700_v13  ;;  %702 = vmatprep.subr.bf16.mxu0 %v766_v3  ;;  %v563_v25 = vld [vmem:[%s966_s2 + $0x78] sm:$0xff]  ;;  %v32_v26 = vsub.f32 %v30_v20, %v31_v18  ;;  %v706_v27 = vpack.c.bf16 %v558_v23, %v557_v22  ;;  %v34_v30 = vmul.f32 %v31_v18, %v30_v20  ;;  %v357_v31 = vld [vmem:[%s968_s4] sm:$0xff]  ;;  %v358_v32 = vld [vmem:[%s968_s4 + $0x8] sm:$0xff]  ;;  %s541_s28 = sshll.u32 %s769_s27, 4  ;;  %s542_s28 = int_to_ptr.vmem [resolvable:$true] %s541_s28 }
   0xa   :  { %708 = vmatprep.subr.bf16.mxu1 %v766_v3  ;;  %v712_v28 = vpack.c.bf16 %v563_v25, %v562_v24  ;;  %v715_v33 = vpack.c.bf16 %v358_v32, %v357_v31  ;;  %v359_v34 = vld [vmem:[%s968_s4 + $0x10] sm:$0xff]  ;;  %v360_v35 = vld [vmem:[%s968_s4 + $0x18] sm:$0xff]  ;;  %v361_v37 = vld [vmem:[%s968_s4 + $0x20] sm:$0xff]  ;;  %p747_p1 = scmp.lt.s32.totalorder %s542_s28, %s542_s28 }
   0xb   :  { %617 = vmatmul.mubr.msk.f32.vlgmr.msra.gmra.mrb[0].mxu0 %vm44_vm1, %v31_v18  ;;  %v33_v29 = vand.u32 2147483647, %v32_v26  ;;  %v718_v36 = vpack.c.bf16 %v360_v35, %v359_v34  ;;  %v362_v38 = vld [vmem:[%s968_s4 + $0x28] sm:$0xff]  ;;  %v363_v40 = vld [vmem:[%s968_s4 + $0x30] sm:$0xff]  ;;  %v364_v41 = vld [vmem:[%s968_s4 + $0x38] sm:$0xff] }
   0xc   :  { %628 = vmatmul.mubr.msk.f32.vlgmr.msra.gmra.mrb[0].mxu1 %vm44_vm1, %v30_v20  ;;  %704 = vmatpush3.bf16.msra.mxu0 %v703_v19  ;;  %v721_v39 = vpack.c.bf16 %v362_v38, %v361_v37  ;;  %v724_v42 = vpack.c.bf16 %v364_v41, %v363_v40  ;;  %v446_v43 = vld [vmem:[%s970_s6] sm:$0xff]  ;;  %v447_v44 = vld [vmem:[%s970_s6 + $0x8] sm:$0xff]  ;;  %v448_v45 = vld [vmem:[%s970_s6 + $0x10] sm:$0xff] }
   0xd   :  { %710 = vmatpush3.bf16.msra.mxu1 %v709_v21  ;;  %705 = vmatprep.subr.bf16.mxu0 %v766_v3  ;;  %v727_v46 = vpack.c.bf16 %v447_v44, %v446_v43  ;;  %v449_v47 = vld [vmem:[%s970_s6 + $0x18] sm:$0xff]  ;;  %v450_v49 = vld [vmem:[%s970_s6 + $0x20] sm:$0xff]  ;;  %v451_v50 = vld [vmem:[%s970_s6 + $0x28] sm:$0xff] }
   0xe   :  { %711 = vmatprep.subr.bf16.mxu1 %v766_v3  ;;  %638 = vmatprep.mubr.msk.f32.mxu0 %vm767_vm0, %v768_v11  ;;  %v730_v48 = vpack.c.bf16 %v449_v47, %v448_v45  ;;  %v733_v51 = vpack.c.bf16 %v451_v50, %v450_v49  ;;  %v565_v61 = vld [vmem:[%s967_s3] ss:$0 sm:$0xff]  ;;  %v452_v1 = vld [vmem:[%s970_s6 + $0x30] sm:$0xff]  ;;  %v453_v2 = vld [vmem:[%s970_s6 + $0x38] sm:$0xff]  ;;  %s742_s6 = scalar_lea.vmem %s542_s28, 32 }
   0xf   :  { %649 = vmatprep.mubr.msk.f32.mxu1 %vm767_vm0, %v768_v11  ;;  %v566_v4 = vld [vmem:[%s969_s5] ss:$0 sm:$0xff]  ;;  %p743_p0 = scmp.ne.s32.totalorder %s542_s28, %s742_s6  ;;  %p748_p2 = scmp.lt.s32.totalorder %s742_s6, %s742_s6 }
  0x10   :  { %707 = vmatpush3.bf16.msra.mxu0 %v706_v27  ;;  %v568_v8 = vld [vmem:[%s971_s7] ss:$0 sm:$0xff] }
  0x11   :  { %713 = vmatpush3.bf16.msra.mxu1 %v712_v28  ;;  %714 = vmatprep.subr.bf16.mxu0 %v766_v3  ;;  %p749_p3 = por %p748_p2, %p747_p1 }
  0x12   :  { %726 = vmatprep.subr.bf16.mxu1 %v766_v3 }
  0x13   :  { %639 = vmatmul.mubr.msk.f32.vlgmr.msra.gmra.mrb[2].mxu0 %vm44_vm1, %v33_v29  ;;  %p750_p4 = pnand %p749_p3, %p743_p0 }
  0x14   :  { %650 = vmatmul.mubr.msk.f32.vlgmr.msra.gmra.mrb[2].mxu1 %vm44_vm1, %v34_v30  ;;  %668 = vmatprep.mubr.msk.f32.mxu0 %vm767_vm0, %v768_v11 }
  0x15   :  { %687 = vmatprep.mubr.msk.f32.mxu1 %vm767_vm0, %v768_v11  ;;  %716 = vmatpush3.bf16.msra.mxu0 %v715_v33 }
  0x16   :  { %717 = vmatprep.subr.bf16.mxu0 %v766_v3  ;;  %728 = vmatpush3.bf16.msra.mxu1 %v727_v46 }
  0x17   :  { %729 = vmatprep.subr.bf16.mxu1 %v766_v3 }
  0x19   :  { %719 = vmatpush3.bf16.msra.mxu0 %v718_v36 }
  0x1a   :  { %720 = vmatprep.subr.bf16.mxu0 %v766_v3  ;;  %731 = vmatpush3.bf16.msra.mxu1 %v730_v48 }
  0x1b   :  { %732 = vmatprep.subr.bf16.mxu1 %v766_v3 }
  0x1d   :  { %722 = vmatpush3.bf16.msra.mxu0 %v721_v39 }
  0x1e   :  { %723 = vmatprep.subr.bf16.mxu0 %v766_v3  ;;  %734 = vmatpush3.bf16.msra.mxu1 %v733_v51 }
  0x1f   :  { %735 = vmatprep.subr.bf16.mxu1 %v766_v3  ;;  %v736_v3 = vpack.c.bf16 %v453_v2, %v452_v1 }
  0x21   :  { %725 = vmatpush3.bf16.msra.mxu0 %v724_v42 }
  0x22   :  { %737 = vmatpush3.bf16.msra.mxu1 %v736_v3 }
  0xde   :  { %v114_v52 = vpop.f32.mrb[0].mxu0 }
  0xdf   :  { %v618_v53 = vpop.f32.mrb[1].mxu0  ;;  %v187_v54 = vpop.f32.mrb[0].mxu1 }
  0xe0   :  { %v188_v55 = vadd.f32 %v187_v54, %v114_v52  ;;  %v629_v56 = vpop.f32.mrb[1].mxu1 }
  0xe6   :  { %v265_v57 = vpop.f32.mrb[2].mxu0 }
  0xe7   :  { %v269_v58 = vadd.f32 %v265_v57, %v188_v55  ;;  %v640_v59 = vpop.f32.mrb[3].mxu0  ;;  %v344_v60 = vpop.f32.mrb[2].mxu1 }
  0xe8   :  { %v651_v62 = vpop.f32.mrb[3].mxu1 }
  0xe9   :  { %v348_v63 = vadd.f32 %v344_v60, %v269_v58 }
  0xeb   :  { %v356_v0 = vadd.f32 %v565_v61, %v348_v63 }
  0xed   :  { %669 = vmatmul.mubr.msk.f32.vlgmr.msra.gmra.mrb[4].mxu0 %vm372_vm2, %v356_v0 }
 0x1c0   :  { %v442_v5 = vpop.f32.mrb[4].mxu0 }
 0x1c1   :  { %v443_v6 = vadd.f32 %v566_v4, %v442_v5  ;;  %v670_v7 = vpop.f32.mrb[5].mxu0 }
 0x1c3   :  { %688 = vmatmul.mubr.msk.f32.vlgmr.msra.gmra.mrb[4].mxu1 %vm372_vm2, %v443_v6 }
 0x296   :  { %v530_v9 = vpop.f32.mrb[4].mxu1 }
 0x297   :  { %v531_v10 = vadd.f32 %v568_v8, %v530_v9  ;;  %v689_v11 = vpop.f32.mrb[5].mxu1 }
 0x299   :  { %534 = vst [vmem:[#allocation2] sm:$0x3] %v531_v10 }
 0x29a   :  { %753 = shalt.err (!%p750_p4)
}
 0x29b   :  { %s754_s30 = scalar_lea.hbm %s972_s8, 32 }
 0x29c   :  { %p755_p5 = scmp.ne.s32.totalorder %s972_s8, %s754_s30  ;;  %p758_p6 = scmp.lt.u32.totalorder %s754_s30, %s972_s8 }
 0x29e   :  { %p760_p7 = pnand %p758_p6, %p755_p5 }
 0x2a0   :  { %763 = shalt.err (!%p760_p7)
}
 0x2a1   :  { %544 = dma.vmem_to_hbm [thread:$0]  %s542_s28, 32, %s972_s8, [#allocation3]  }
 0x2a2   :  { %764 = dma.done.wait [#allocation3], 32  }
 0x2a3   :  { %765 = vsyncadd [#allocation3], 4294967264 }
 0x2a4   :  { %548 = vsyncpa [#allocation3], 1 }

// kernel: lstm_maxpool_nli_forward.2
= control target key start
LH: loop header
LB: loop body
LE: loop exit
PB: predicated region body
PF: predicated region fallthrough
CT: control target
= control target key end

     0   :  { %vm30_vm0 = vcmask 261120   ;;  %v1427_v0 = vmov 0   ;;  %v1428_v2 = vmov 0.0   ;;  %s1691_s2 = inlined_call_operand.vmem [shape: f32[8,1], index: 2, kind: input, shape index: {}]   ;;  %s1692_s0 = inlined_call_operand.<no memory space> [shape: s32[1], index: 0, kind: input, shape index: {}]   ;;  %s1693_s1 = inlined_call_operand.vmem [shape: s32[8,1], index: 1, kind: input, shape index: {}]   ;;  %s1694_s3 = inlined_call_operand.vmem [shape: f32[64,16], index: 3, kind: input, shape index: {}]   ;;  %s1695_s4 = inlined_call_operand.vmem [shape: f32[16,128], index: 4, kind: input, shape index: {}]   ;;  %s1696_s5 = inlined_call_operand.vmem [shape: f32[32,128], index: 5, kind: input, shape index: {}]   ;;  %s1697_s6 = inlined_call_operand.vmem [shape: f32[1,128], index: 6, kind: input, shape index: {}]   ;;  %s1698_s7 = inlined_call_operand.vmem [shape: f32[8,32], index: 7, kind: output, shape index: {}]  }
   0x1   :  { %1360 = vset.pattern.permute.xlu0 %v1427_v0  ;;  %v33_v1 = vld [vmem:[%s1691_s2] sm:$0xff]  ;;  %31 = vst.msk [vmem:[#allocation2] sm:$0xff] %vm30_vm0, %v1428_v2  ;;  %32 = vst.msk [vmem:[#allocation3] sm:$0xff] %vm30_vm0, %v1428_v2  ;;  %p1111_p0 = scmp.le.s32.totalorder %s1692_s0, 0 }
   0x2   :  { %36 = vperm.xlu0 %1360, %v33_v1   ;;  %v53_v4 = vld [vmem:[%s1695_s4] sm:$0xff] (!%p1111_p0)  ;;  %v54_v5 = vld [vmem:[%s1695_s4 + $0x8] sm:$0xff] (!%p1111_p0)  ;;  %vm62_vm1 = vcmask (!%p1111_p0), 130048   ;;  %v1429_v7 = vmov (!%p1111_p0), 0.0|0.0   ;;  %v198_v12 = vld [vmem:[%s1696_s5 + $0x10] sm:$0xff] (!%p1111_p0)  ;;  %vm1430_vm2 = vmmov (!%p1111_p0), 0  }
   0x3   :  { %v196_v6 = vld [vmem:[%s1696_s5] sm:$0xff] (!%p1111_p0)  ;;  %1303 = vmatprep.subr.bf16.mxu1 (!%p1111_p0), %v1429_v7  ;;  %v1299_v8 = vpack.c.bf16 (!%p1111_p0), %v54_v5, %v53_v4  ;;  %v197_v9 = vld [vmem:[%s1696_s5 + $0x8] sm:$0xff] (!%p1111_p0)  ;;  %v199_v13 = vld [vmem:[%s1696_s5 + $0x18] sm:$0xff] (!%p1111_p0)  ;;  %v1431_v14 = vmov (!%p1111_p0), 0.0   ;;  %s1432_s19 = smov (!%p1111_p0), 64   ;;  %s1433_s20 = smov (!%p1111_p0), 32  }
   0x4   :  { %v45_v10 = vld [vmem:[%s1694_s3] sm:$0xff] (!%p1111_p0)  ;;  %v1501_v11 = vpack.c.bf16 (!%p1111_p0), %v197_v9, %v196_v6  ;;  %1219 = vmatprep.mubr.msk.f32.mxu1 (!%p1111_p0), %vm1430_vm2, %v1431_v14  ;;  %v46_v15 = vld [vmem:[%s1694_s3 + $0x8] sm:$0xff] (!%p1111_p0)  ;;  %v1516_v16 = vpack.c.bf16 (!%p1111_p0), %v199_v13, %v198_v12  ;;  %v47_v55 = vld [vmem:[%s1694_s3 + $0x10] sm:$0xff] (!%p1111_p0) }
   0x5   :  { %1199 = vmatprep.mubr.msk.f32.mxu0 (!%p1111_p0), %vm62_vm1, %v45_v10  ;;  %1300 = vmatprep.subr.bf16.mxu0 (!%p1111_p0), %v1299_v8  ;;  %v1537_v18 = vld [vmem:[%s1697_s6] ss:$0 sm:$0xff] (!%p1111_p0)  ;;  %v48_v56 = vld [vmem:[%s1694_s3 + $0x18] sm:$0xff] (!%p1111_p0)  ;;  %v50_v58 = vld [vmem:[%s1694_s3 + $0x28] sm:$0xff] (!%p1111_p0) }
   0x6   :  { %1305 = vmatpush3.bf16.msra.mxu1 (!%p1111_p0), %v1501_v11  ;;  %1302 = vmatpush3.bf16.msra.mxu0 (!%p1111_p0), %v1299_v8  ;;  %v49_v57 = vld [vmem:[%s1694_s3 + $0x20] sm:$0xff] (!%p1111_p0)  ;;  %v51_v59 = vld [vmem:[%s1694_s3 + $0x30] sm:$0xff] (!%p1111_p0)  ;;  %v52_v60 = vld [vmem:[%s1694_s3 + $0x38] sm:$0xff] (!%p1111_p0) }
   0x7   :  { %1306 = vmatprep.subr.bf16.mxu1 (!%p1111_p0), %v1429_v7  ;;  %1315 = vmatprep.subr.bf16.mxu0 (!%p1111_p0), %v1429_v7 }
   0x8   :  { %v193_v17 = vld [vmem:[#allocation2] sm:$0xff] (!%p1111_p0)  ;;  %v194_v26 = vld [vmem:[#allocation3] sm:$0xff] (!%p1111_p0) }
   0x9   :  { %1200 = vmatmul.mubr.msk.f32.vlgmr.msra.gmra.mrb[0].mxu0 (!%p1111_p0), %vm62_vm1, %v46_v15 }
   0xa   :  { %1308 = vmatpush3.bf16.msra.mxu1 (!%p1111_p0), %v1516_v16  ;;  %1317 = vmatpush3.bf16.msra.mxu0 (!%p1111_p0), %v1501_v11 }
   0xb   :  { %1309 = vmatprep.subr.bf16.mxu1 (!%p1111_p0), %v1429_v7  ;;  %1318 = vmatprep.subr.bf16.mxu0 (!%p1111_p0), %v1429_v7 }
   0xc   :  { %1202 = vmatprep.mubr.msk.f32.mxu0 (!%p1111_p0), %vm62_vm1, %v47_v55 }
   0xd   :  { %1220 = vmatmul.mubr.msk.f32.vlgmr.msra.gmra.mrb[0].mxu1 (!%p1111_p0), %vm30_vm0, %v193_v17  ;;  %1203 = vmatmul.mubr.msk.f32.gmra.mrb[2].mxu0 (!%p1111_p0), %vm62_vm1, %v48_v56 }
   0xe   :  { %1311 = vmatpush3.bf16.msra.mxu1 (!%p1111_p0), %v1501_v11  ;;  %1230 = vmatprep.mubr.msk.f32.mxu1 (!%p1111_p0), %vm1430_vm2, %v1431_v14 }
   0xf   :  { %1312 = vmatprep.subr.bf16.mxu1 (!%p1111_p0), %v1429_v7  ;;  %1320 = vmatpush3.bf16.msra.mxu0 (!%p1111_p0), %v1516_v16 }
  0x10   :  { %1327 = vmatprep.subr.bf16.mxu0 (!%p1111_p0), %v1429_v7  ;;  %1205 = vmatprep.mubr.msk.f32.mxu0 (!%p1111_p0), %vm62_vm1, %v49_v57 }
  0x11   :  { %1206 = vmatmul.mubr.msk.f32.gmra.mrb[4].mxu0 (!%p1111_p0), %vm62_vm1, %v50_v58 }
  0x12   :  { %1314 = vmatpush3.bf16.msra.mxu1 (!%p1111_p0), %v1516_v16  ;;  %1208 = vmatprep.mubr.msk.f32.mxu0 (!%p1111_p0), %vm62_vm1, %v51_v59 }
  0x13   :  { %1321 = vmatprep.subr.bf16.mxu1 (!%p1111_p0), %v1429_v7 }
  0x15   :  { %1209 = vmatmul.mubr.msk.f32.gmra.mrb[6].mxu0 (!%p1111_p0), %vm62_vm1, %v52_v60 }
  0x16   :  { %1241 = vmatprep.mubr.msk.f32.mxu0 (!%p1111_p0), %vm1430_vm2, %v1431_v14 }
  0x7c   :  { %44 = sbr.rel (%p1111_p0) target bundleno = 5633 (0x1601), region = 33 }
  0x81   :  { %v37_v3 = vpop.permute.xlu0 %36 }
  0x82   :  { %39 = vst.msk [vmem:[#allocation4] sm:$0xff] %vm30_vm0, %v37_v3 }
  0xdc   :  { %v1201_v19 = vpop.f32.mrb[0].mxu0 }
  0xdd   :  { %v153_v20 = vpop.f32.mrb[1].mxu0  ;;  %v159_v41 = vadd.f32 %v1201_v19, %v1537_v18 }
  0xde   :  { %v154_v21 = vadd.f32 %v1537_v18, %v153_v20 }
  0xe0   :  { %v270_v22 = vpop.f32.mrb[0].mxu1  ;;  %v1204_v0 = vpop.f32.mrb[2].mxu0 }
  0xe1   :  { %v274_v23 = vadd.f32 %v270_v22, %v154_v21  ;;  %v1221_v24 = vpop.f32.mrb[1].mxu1  ;;  %v163_v1 = vpop.f32.mrb[3].mxu0 }
  0xe2   :  { %v164_v8 = vadd.f32 %v1537_v18, %v163_v1 }
  0xe3   :  { %1363 = vtanh.f32 %v274_v23  ;;  %v1122_v27 = vmul.f32 -1.442695, %v274_v23 }
  0xe4   :  { %v1586_v2 = vpop.f32.mrb[4].mxu0 }
  0xe5   :  { %1365 = vpow2.f32 %v1122_v27  ;;  %v1588_v3 = vpop.f32.mrb[5].mxu0 }
  0xe8   :  { %v1590_v4 = vpop.f32.mrb[6].mxu0 }
  0xe9   :  { %v1592_v5 = vpop.f32.mrb[7].mxu0 }
  0xed   :  { %v1364_v25 = vpop.eup %1363 }
  0xee   :  { %288 = vrot.lane.b32.xlu0 %v1364_v25, %s1432_s19 }
  0xef   :  { %v1366_v28 = vpop.eup %1365 }
  0xf0   :  { %v278_v29 = vadd.f32 1.0, %v1366_v28 }
  0xf2   :  { %283 = vrot.lane.b32.xlu0 %v194_v26, %s1433_s20  ;;  %1367 = vrcp.f32 %v278_v29 }
  0xfc   :  { %v1368_v30 = vpop.eup %1367 }
 0x160   :  { %v289_v31 = vpop.permute.xlu0 %288 }
 0x161   :  { %v291_v32 = vmul.f32 %v1368_v30, %v289_v31 }
 0x163   :  { %293 = vrot.lane.b32.xlu1 %v291_v32, %s1433_s20 }
 0x164   :  { %v284_v33 = vpop.permute.xlu0 %283 }
 0x165   :  { %v286_v34 = vmul.f32 %v1368_v30, %v284_v33 }
 0x1d5   :  { %v294_v35 = vpop.permute.xlu1 %293 }
 0x1d6   :  { %v296_v36 = vadd.f32 %v294_v35, %v286_v34 }
 0x1d8   :  { %1369 = vtanh.f32 %v296_v36 }
 0x1e2   :  { %v1370_v37 = vpop.eup %1369 }
 0x1e3   :  { %299 = vrot.lane.b32.xlu1 %v1370_v37, %s1432_s19 }
 0x255   :  { %v300_v38 = vpop.permute.xlu1 %299 }
 0x256   :  { %v302_v39 = vmul.f32 %v1368_v30, %v300_v38  ;;  %v169_v30 = vadd.f32 %v1204_v0, %v1537_v18 }
 0x258   :  { %306 = vrot.lane.b32.xlu0 %v302_v39, %s1433_s20 }
 0x2ca   :  { %v1545_v40 = vpop.permute.xlu0 %306 }
 0x2cb   :  { %1231 = vmatmul.mubr.msk.f32.vlgmr.msra.gmra.mrb[2].mxu1 %vm30_vm0, %v1545_v40 }
 0x2cc   :  { %1323 = vmatpush3.bf16.msra.mxu1 %v1501_v11  ;;  %1252 = vmatprep.mubr.msk.f32.mxu1 %vm1430_vm2, %v1431_v14 }
 0x2cd   :  { %1324 = vmatprep.subr.bf16.mxu1 %v1429_v7 }
 0x2d0   :  { %1326 = vmatpush3.bf16.msra.mxu1 %v1516_v16 }
 0x2d1   :  { %1333 = vmatprep.subr.bf16.mxu1 %v1429_v7 }
 0x39e   :  { %v384_v42 = vpop.f32.mrb[2].mxu1 }
 0x39f   :  { %v388_v43 = vadd.f32 %v384_v42, %v159_v41  ;;  %v1232_v44 = vpop.f32.mrb[3].mxu1 }
 0x3a1   :  { %1371 = vtanh.f32 %v388_v43  ;;  %v1125_v46 = vmul.f32 -1.442695, %v388_v43 }
 0x3a3   :  { %1373 = vpow2.f32 %v1125_v46 }
 0x3ab   :  { %v1372_v45 = vpop.eup %1371 }
 0x3ac   :  { %398 = vrot.lane.b32.xlu1 %v1372_v45, %s1432_s19 }
 0x3ad   :  { %v1374_v47 = vpop.eup %1373 }
 0x3ae   :  { %v392_v48 = vadd.f32 1.0, %v1374_v47 }
 0x3b0   :  { %1375 = vrcp.f32 %v392_v48 }
 0x3ba   :  { %v1376_v49 = vpop.eup %1375 }
 0x3bb   :  { %v396_v52 = vmul.f32 %v1376_v49, %v296_v36 }
 0x41e   :  { %v399_v50 = vpop.permute.xlu1 %398 }
 0x41f   :  { %v401_v51 = vmul.f32 %v1376_v49, %v399_v50 }
 0x421   :  { %403 = vrot.lane.b32.xlu0 %v401_v51, %s1433_s20 }
 0x493   :  { %v404_v53 = vpop.permute.xlu0 %403 }
 0x494   :  { %v406_v54 = vadd.f32 %v404_v53, %v396_v52 }
 0x496   :  { %1377 = vtanh.f32 %v406_v54 }
 0x4a0   :  { %v1378_v61 = vpop.eup %1377 }
 0x4a1   :  { %409 = vrot.lane.b32.xlu1 %v1378_v61, %s1432_s19 }
 0x513   :  { %v410_v62 = vpop.permute.xlu1 %409 }
 0x514   :  { %v412_v63 = vmul.f32 %v1376_v49, %v410_v62  ;;  %v174_v49 = vadd.f32 %v1537_v18, %v1588_v3 }
 0x516   :  { %417 = vrot.lane.b32.xlu0 %v412_v63, %s1433_s20 }
 0x588   :  { %v1594_v6 = vpop.permute.xlu0 %417 }
 0x589   :  { %1242 = vmatmul.mubr.msk.f32.vlgmr.msra.gmra.mrb[8].mxu0 %vm30_vm0, %v1594_v6 }
 0x58a   :  { %1329 = vmatpush3.bf16.msra.mxu0 %v1501_v11  ;;  %1263 = vmatprep.mubr.msk.f32.mxu0 %vm1430_vm2, %v1431_v14 }
 0x58b   :  { %1330 = vmatprep.subr.bf16.mxu0 %v1429_v7 }
 0x58e   :  { %1332 = vmatpush3.bf16.msra.mxu0 %v1516_v16 }
 0x58f   :  { %1339 = vmatprep.subr.bf16.mxu0 %v1429_v7 }
 0x65c   :  { %v495_v9 = vpop.f32.mrb[8].mxu0 }
 0x65d   :  { %v499_v10 = vadd.f32 %v495_v9, %v164_v8  ;;  %v1243_v12 = vpop.f32.mrb[9].mxu0  ;;  %v179_v8 = vadd.f32 %v1586_v2, %v1537_v18 }
 0x65f   :  { %1379 = vtanh.f32 %v499_v10  ;;  %v1128_v15 = vmul.f32 -1.442695, %v499_v10 }
 0x661   :  { %1381 = vpow2.f32 %v1128_v15 }
 0x669   :  { %v1380_v13 = vpop.eup %1379 }
 0x66a   :  { %509 = vrot.lane.b32.xlu1 %v1380_v13, %s1432_s19 }
 0x66b   :  { %v1382_v17 = vpop.eup %1381 }
 0x66c   :  { %v503_v19 = vadd.f32 1.0, %v1382_v17 }
 0x66e   :  { %1383 = vrcp.f32 %v503_v19 }
 0x678   :  { %v1384_v20 = vpop.eup %1383 }
 0x679   :  { %v507_v23 = vmul.f32 %v1384_v20, %v406_v54 }
 0x6dc   :  { %v510_v21 = vpop.permute.xlu1 %509 }
 0x6dd   :  { %v512_v22 = vmul.f32 %v1384_v20, %v510_v21 }
 0x6df   :  { %514 = vrot.lane.b32.xlu0 %v512_v22, %s1433_s20 }
 0x751   :  { %v515_v24 = vpop.permute.xlu0 %514 }
 0x752   :  { %v517_v25 = vadd.f32 %v515_v24, %v507_v23 }
 0x754   :  { %1385 = vtanh.f32 %v517_v25 }
 0x75e   :  { %v1386_v26 = vpop.eup %1385 }
 0x75f   :  { %520 = vrot.lane.b32.xlu1 %v1386_v26, %s1432_s19 }
 0x7d1   :  { %v521_v27 = vpop.permute.xlu1 %520 }
 0x7d2   :  { %v523_v28 = vmul.f32 %v1384_v20, %v521_v27 }
 0x7d4   :  { %528 = vrot.lane.b32.xlu0 %v523_v28, %s1433_s20 }
 0x846   :  { %v1609_v29 = vpop.permute.xlu0 %528 }
 0x847   :  { %1253 = vmatmul.mubr.msk.f32.vlgmr.msra.gmra.mrb[4].mxu1 %vm30_vm0, %v1609_v29 }
 0x848   :  { %1335 = vmatpush3.bf16.msra.mxu1 %v1501_v11  ;;  %1274 = vmatprep.mubr.msk.f32.mxu1 %vm1430_vm2, %v1431_v14 }
 0x849   :  { %1336 = vmatprep.subr.bf16.mxu1 %v1429_v7 }
 0x84c   :  { %1338 = vmatpush3.bf16.msra.mxu1 %v1516_v16 }
 0x84d   :  { %1345 = vmatprep.subr.bf16.mxu1 %v1429_v7 }
 0x91a   :  { %v606_v31 = vpop.f32.mrb[4].mxu1 }
 0x91b   :  { %v610_v32 = vadd.f32 %v606_v31, %v169_v30  ;;  %v1254_v33 = vpop.f32.mrb[5].mxu1 }
 0x91d   :  { %1387 = vtanh.f32 %v610_v32  ;;  %v1131_v35 = vmul.f32 -1.442695, %v610_v32 }
 0x91f   :  { %1389 = vpow2.f32 %v1131_v35 }
 0x927   :  { %v1388_v34 = vpop.eup %1387 }
 0x928   :  { %620 = vrot.lane.b32.xlu1 %v1388_v34, %s1432_s19 }
 0x929   :  { %v1390_v36 = vpop.eup %1389 }
 0x92a   :  { %v614_v37 = vadd.f32 1.0, %v1390_v36 }
 0x92c   :  { %1391 = vrcp.f32 %v614_v37 }
 0x936   :  { %v1392_v38 = vpop.eup %1391 }
 0x937   :  { %v618_v42 = vmul.f32 %v1392_v38, %v517_v25  ;;  %v184_v25 = vadd.f32 %v1537_v18, %v1592_v5 }
 0x99a   :  { %v621_v39 = vpop.permute.xlu1 %620 }
 0x99b   :  { %v623_v41 = vmul.f32 %v1392_v38, %v621_v39 }
 0x99d   :  { %625 = vrot.lane.b32.xlu0 %v623_v41, %s1433_s20 }
 0xa0f   :  { %v626_v43 = vpop.permute.xlu0 %625 }
 0xa10   :  { %v628_v44 = vadd.f32 %v626_v43, %v618_v42 }
 0xa12   :  { %1393 = vtanh.f32 %v628_v44 }
 0xa1c   :  { %v1394_v45 = vpop.eup %1393 }
 0xa1d   :  { %631 = vrot.lane.b32.xlu1 %v1394_v45, %s1432_s19 }
 0xa8f   :  { %v632_v46 = vpop.permute.xlu1 %631 }
 0xa90   :  { %v634_v47 = vmul.f32 %v1392_v38, %v632_v46 }
 0xa92   :  { %639 = vrot.lane.b32.xlu0 %v634_v47, %s1433_s20 }
 0xb04   :  { %v1624_v48 = vpop.permute.xlu0 %639 }
 0xb05   :  { %1264 = vmatmul.mubr.msk.f32.vlgmr.msra.gmra.mrb[10].mxu0 %vm30_vm0, %v1624_v48 }
 0xb06   :  { %1341 = vmatpush3.bf16.msra.mxu0 %v1501_v11  ;;  %1285 = vmatprep.mubr.msk.f32.mxu0 %vm1430_vm2, %v1431_v14 }
 0xb07   :  { %1342 = vmatprep.subr.bf16.mxu0 %v1429_v7 }
 0xb0a   :  { %1344 = vmatpush3.bf16.msra.mxu0 %v1516_v16 }
 0xbd8   :  { %v717_v50 = vpop.f32.mrb[10].mxu0 }
 0xbd9   :  { %v721_v51 = vadd.f32 %v717_v50, %v174_v49  ;;  %v1265_v52 = vpop.f32.mrb[11].mxu0  ;;  %v1434_v49 = vmov 0  }
 0xbda   :  { %1361 = vset.pattern.permute.xlu0 %v1434_v49  ;;  %1362 = vset.pattern.permute.xlu1 %v1434_v49 }
 0xbdb   :  { %1395 = vtanh.f32 %v721_v51  ;;  %v1134_v54 = vmul.f32 -1.442695, %v721_v51 }
 0xbdd   :  { %1397 = vpow2.f32 %v1134_v54  ;;  %v192_v54 = vld [vmem:[%s1693_s1] sm:$0xff]  ;;  %s1435_s1 = smov 96  }
 0xbde   :  { %vm1123_vm3 = vcmp.gt.s32.totalorder %v192_v54, 0  ;;  %vm1132_vm4 = vcmp.gt.s32.totalorder %v192_v54, 3  ;;  %vm1138_vm5 = vcmp.gt.s32.totalorder %v192_v54, 5  ;;  %vm1144_vm6 = vcmp.gt.s32.totalorder %v192_v54, 7 }
 0xbdf   :  { %vm1126_vm7 = vcmp.gt.s32.totalorder %v192_v54, 1  ;;  %vm1129_vm8 = vcmp.gt.s32.totalorder %v192_v54, 2  ;;  %vm1135_vm9 = vcmp.gt.s32.totalorder %v192_v54, 4  ;;  %vm1141_vm10 = vcmp.gt.s32.totalorder %v192_v54, 6 }
 0xbe5   :  { %v1396_v53 = vpop.eup %1395 }
 0xbe6   :  { %731 = vrot.lane.b32.xlu1 %v1396_v53, %s1432_s19 }
 0xbe7   :  { %v1398_v55 = vpop.eup %1397 }
 0xbe8   :  { %v725_v56 = vadd.f32 1.0, %v1398_v55 }
 0xbea   :  { %1399 = vrcp.f32 %v725_v56  ;;  %v310_v56 = vsel %vm1123_vm3, 1, %v1434_v49 }
 0xbf4   :  { %v1400_v57 = vpop.eup %1399 }
 0xbf5   :  { %v729_v60 = vmul.f32 %v1400_v57, %v628_v44  ;;  %v189_v44 = vadd.f32 %v1590_v4, %v1537_v18 }
 0xc58   :  { %v732_v58 = vpop.permute.xlu1 %731 }
 0xc59   :  { %v734_v59 = vmul.f32 %v1400_v57, %v732_v58  ;;  %v865_v58 = vsel %vm1138_vm5, 1, %v1434_v49 }
 0xc5b   :  { %736 = vrot.lane.b32.xlu0 %v734_v59, %s1433_s20  ;;  %v1087_v59 = vsel %vm1144_vm6, 1, %v1434_v49 }
 0xccd   :  { %v737_v61 = vpop.permute.xlu0 %736 }
 0xcce   :  { %v739_v62 = vadd.f32 %v737_v61, %v729_v60 }
 0xcd0   :  { %1401 = vtanh.f32 %v739_v62 }
 0xcda   :  { %v1402_v63 = vpop.eup %1401 }
 0xcdb   :  { %742 = vrot.lane.b32.xlu1 %v1402_v63, %s1432_s19 }
 0xd4d   :  { %v743_v0 = vpop.permute.xlu1 %742 }
 0xd4e   :  { %v745_v1 = vmul.f32 %v1400_v57, %v743_v0  ;;  %v643_v57 = vsel %vm1132_vm4, 1, %v1434_v49  ;;  %v421_v0 = vsel %vm1126_vm7, 1, %v1434_v49 }
 0xd50   :  { %750 = vrot.lane.b32.xlu0 %v745_v1, %s1433_s20  ;;  %v532_v1 = vsel %vm1129_vm8, 1, %v1434_v49 }
 0xdc2   :  { %v1639_v3 = vpop.permute.xlu0 %750 }
 0xdc3   :  { %1275 = vmatmul.mubr.msk.f32.vlgmr.msra.gmra.mrb[6].mxu1 %vm30_vm0, %v1639_v3 }
 0xdc4   :  { %1347 = vmatpush3.bf16.msra.mxu1 %v1501_v11  ;;  %1296 = vmatprep.mubr.msk.f32.mxu1 %vm1430_vm2, %v1431_v14 }
 0xdc5   :  { %1348 = vmatprep.subr.bf16.mxu1 %v1429_v7 }
 0xdc8   :  { %1350 = vmatpush3.bf16.msra.mxu1 %v1516_v16 }
 0xe96   :  { %v828_v9 = vpop.f32.mrb[6].mxu1 }
 0xe97   :  { %v832_v10 = vadd.f32 %v828_v9, %v179_v8  ;;  %v1276_v12 = vpop.f32.mrb[7].mxu1  ;;  %v754_v8 = vsel %vm1135_vm9, 1, %v1434_v49  ;;  %v976_v9 = vsel %vm1141_vm10, 1, %v1434_v49 }
 0xe99   :  { %1403 = vtanh.f32 %v832_v10  ;;  %v1137_v15 = vmul.f32 -1.442695, %v832_v10 }
 0xe9b   :  { %1405 = vpow2.f32 %v1137_v15 }
 0xea3   :  { %v1404_v13 = vpop.eup %1403 }
 0xea4   :  { %842 = vrot.lane.b32.xlu1 %v1404_v13, %s1432_s19 }
 0xea5   :  { %v1406_v11 = vpop.eup %1405 }
 0xea6   :  { %v836_v17 = vadd.f32 1.0, %v1406_v11 }
 0xea8   :  { %1407 = vrcp.f32 %v836_v17 }
 0xeb2   :  { %v1408_v14 = vpop.eup %1407 }
 0xeb3   :  { %v840_v16 = vmul.f32 %v1408_v14, %v739_v62 }
 0xf16   :  { %v843_v19 = vpop.permute.xlu1 %842 }
 0xf17   :  { %v845_v7 = vmul.f32 %v1408_v14, %v843_v19  ;;  %v195_v19 = vld [vmem:[#allocation4] sm:$0xff] }
 0xf19   :  { %847 = vrot.lane.b32.xlu0 %v845_v7, %s1433_s20  ;;  %v309_v7 = vmax.f32 %v195_v19, %v1545_v40 }
 0xf8b   :  { %v848_v20 = vpop.permute.xlu0 %847 }
 0xf8c   :  { %v850_v2 = vadd.f32 %v848_v20, %v840_v16 }
 0xf8e   :  { %1409 = vtanh.f32 %v850_v2 }
 0xf98   :  { %v1410_v21 = vpop.eup %1409 }
 0xf99   :  { %853 = vrot.lane.b32.xlu1 %v1410_v21, %s1432_s19 }
0x100b   :  { %v854_v22 = vpop.permute.xlu1 %853 }
0x100c   :  { %v856_v23 = vmul.f32 %v1408_v14, %v854_v22 }
0x100e   :  { %861 = vrot.lane.b32.xlu0 %v856_v23, %s1433_s20 }
0x1080   :  { %v1654_v24 = vpop.permute.xlu0 %861 }
0x1081   :  { %1286 = vmatmul.mubr.msk.f32.vlgmr.msra.gmra.mrb[12].mxu0 %vm30_vm0, %v1654_v24 }
0x1154   :  { %v939_v26 = vpop.f32.mrb[12].mxu0 }
0x1155   :  { %v943_v27 = vadd.f32 %v939_v26, %v184_v25  ;;  %v1287_v28 = vpop.f32.mrb[13].mxu0 }
0x1157   :  { %1411 = vtanh.f32 %v943_v27  ;;  %v1140_v31 = vmul.f32 -1.442695, %v943_v27 }
0x1159   :  { %1413 = vpow2.f32 %v1140_v31 }
0x1161   :  { %v1412_v30 = vpop.eup %1411 }
0x1162   :  { %953 = vrot.lane.b32.xlu1 %v1412_v30, %s1432_s19 }
0x1163   :  { %v1414_v32 = vpop.eup %1413 }
0x1164   :  { %v947_v33 = vadd.f32 1.0, %v1414_v32 }
0x1166   :  { %1415 = vrcp.f32 %v947_v33 }
0x1170   :  { %v1416_v34 = vpop.eup %1415 }
0x1171   :  { %v951_v37 = vmul.f32 %v1416_v34, %v850_v2 }
0x11d4   :  { %v954_v35 = vpop.permute.xlu1 %953 }
0x11d5   :  { %v956_v36 = vmul.f32 %v1416_v34, %v954_v35 }
0x11d7   :  { %958 = vrot.lane.b32.xlu0 %v956_v36, %s1433_s20 }
0x1249   :  { %v959_v38 = vpop.permute.xlu0 %958 }
0x124a   :  { %v961_v5 = vadd.f32 %v959_v38, %v951_v37 }
0x124c   :  { %1417 = vtanh.f32 %v961_v5 }
0x1256   :  { %v1418_v39 = vpop.eup %1417 }
0x1257   :  { %964 = vrot.lane.b32.xlu1 %v1418_v39, %s1432_s19 }
0x12c9   :  { %v965_v41 = vpop.permute.xlu1 %964 }
0x12ca   :  { %v967_v42 = vmul.f32 %v1416_v34, %v965_v41 }
0x12cc   :  { %972 = vrot.lane.b32.xlu0 %v967_v42, %s1433_s20 }
0x133e   :  { %v1664_v43 = vpop.permute.xlu0 %972 }
0x133f   :  { %1297 = vmatmul.mubr.msk.f32.vlgmr.msra.gmra.mrb[8].mxu1 %vm30_vm0, %v1664_v43 }
0x1412   :  { %v1050_v45 = vpop.f32.mrb[8].mxu1 }
0x1413   :  { %v1054_v46 = vadd.f32 %v1050_v45, %v189_v44  ;;  %v1298_v47 = vpop.f32.mrb[9].mxu1 }
0x1415   :  { %1419 = vtanh.f32 %v1054_v46  ;;  %v1143_v51 = vmul.f32 -1.442695, %v1054_v46 }
0x1417   :  { %1421 = vpow2.f32 %v1143_v51 }
0x141f   :  { %v1420_v50 = vpop.eup %1419 }
0x1420   :  { %1064 = vrot.lane.b32.xlu1 %v1420_v50, %s1432_s19 }
0x1421   :  { %v1422_v52 = vpop.eup %1421 }
0x1422   :  { %v1058_v53 = vadd.f32 1.0, %v1422_v52 }
0x1424   :  { %1423 = vrcp.f32 %v1058_v53 }
0x142e   :  { %v1424_v18 = vpop.eup %1423 }
0x142f   :  { %v1062_v60 = vmul.f32 %v1424_v18, %v961_v5 }
0x1492   :  { %v1065_v4 = vpop.permute.xlu1 %1064 }
0x1493   :  { %v1067_v55 = vmul.f32 %v1424_v18, %v1065_v4 }
0x1495   :  { %1069 = vrot.lane.b32.xlu0 %v1067_v55, %s1433_s20 }
0x1499   :  { %312 = vperm.xlu0 %1361, %v310_v56  }
0x149d   :  { %645 = vperm.xlu0 %1361, %v643_v57  }
0x14a1   :  { %867 = vperm.xlu0 %1361, %v865_v58  }
0x14a5   :  { %1089 = vperm.xlu0 %1361, %v1087_v59  }
0x1507   :  { %v1070_v61 = vpop.permute.xlu0 %1069 }
0x1508   :  { %v1072_v62 = vadd.f32 %v1070_v61, %v1062_v60 }
0x150a   :  { %1425 = vtanh.f32 %v1072_v62  ;;  %1095 = vrot.lane.b32.xlu0 %v1072_v62, %s1435_s1 }
0x1514   :  { %v1426_v63 = vpop.eup %1425 }
0x1515   :  { %1075 = vrot.lane.b32.xlu1 %v1426_v63, %s1432_s19 }
0x1518   :  { %v313_v10 = vpop.permute.xlu0 %312 }
0x1519   :  { %423 = vperm.xlu1 %1362, %v421_v0   ;;  %vm314_vm11 = vcmp.eq.s32.totalorder %v313_v10, 1 }
0x151a   :  { %v315_v16 = vsel %vm314_vm11, %v309_v7, %v195_v19 }
0x151b   :  { %v420_v20 = vmax.f32 %v315_v16, %v1594_v6 }
0x151c   :  { %v646_v12 = vpop.permute.xlu0 %645 }
0x151d   :  { %534 = vperm.xlu1 %1362, %v532_v1   ;;  %vm647_vm14 = vcmp.eq.s32.totalorder %v646_v12, 1 }
0x1520   :  { %v868_v13 = vpop.permute.xlu0 %867 }
0x1521   :  { %756 = vperm.xlu1 %1362, %v754_v8   ;;  %vm869_vm1 = vcmp.eq.s32.totalorder %v868_v13, 1 }
0x1524   :  { %v1090_v15 = vpop.permute.xlu0 %1089 }
0x1525   :  { %978 = vperm.xlu1 %1362, %v976_v9   ;;  %vm1091_vm3 = vcmp.eq.s32.totalorder %v1090_v15, 1 }
0x157c   :  { %v1096_v11 = vpop.permute.xlu0 %1095 }
0x157d   :  { %1098 = vst.msk [vmem:[#allocation3] sm:$0xff] %vm30_vm0, %v1096_v11 }
0x1587   :  { %v1076_v17 = vpop.permute.xlu1 %1075 }
0x1588   :  { %v1078_v14 = vmul.f32 %v1424_v18, %v1076_v17 }
0x158a   :  { %1083 = vrot.lane.b32.xlu1 %v1078_v14, %s1433_s20 }
0x1598   :  { %v424_v2 = vpop.permute.xlu1 %423 }
0x1599   :  { %vm425_vm12 = vcmp.eq.s32.totalorder %v424_v2, 1 }
0x159a   :  { %v426_v21 = vsel %vm425_vm12, %v420_v20, %v315_v16 }
0x159b   :  { %v531_v22 = vmax.f32 %v426_v21, %v1609_v29 }
0x159c   :  { %v535_v23 = vpop.permute.xlu1 %534 }
0x159d   :  { %vm536_vm13 = vcmp.eq.s32.totalorder %v535_v23, 1 }
0x159e   :  { %v537_v25 = vsel %vm536_vm13, %v531_v22, %v426_v21 }
0x159f   :  { %v642_v26 = vmax.f32 %v537_v25, %v1624_v48 }
0x15a0   :  { %v757_v27 = vpop.permute.xlu1 %756 }
0x15a1   :  { %v648_v28 = vsel %vm647_vm14, %v642_v26, %v537_v25  ;;  %vm758_vm15 = vcmp.eq.s32.totalorder %v757_v27, 1 }
0x15a2   :  { %v753_v30 = vmax.f32 %v648_v28, %v1639_v3 }
0x15a4   :  { %v759_v40 = vsel %vm758_vm15, %v753_v30, %v648_v28  ;;  %v979_v32 = vpop.permute.xlu1 %978 }
0x15a5   :  { %v864_v6 = vmax.f32 %v759_v40, %v1654_v24  ;;  %vm980_vm2 = vcmp.eq.s32.totalorder %v979_v32, 1 }
0x15a7   :  { %v870_v31 = vsel %vm869_vm1, %v864_v6, %v759_v40 }
0x15a8   :  { %v975_v33 = vmax.f32 %v870_v31, %v1664_v43 }
0x15aa   :  { %v981_v34 = vsel %vm980_vm2, %v975_v33, %v870_v31 }
0x15fc   :  { %v1084_v29 = vpop.permute.xlu1 %1083 }
0x15fd   :  { %v1086_v35 = vmax.f32 %v981_v34, %v1084_v29  ;;  %1093 = vst.msk [vmem:[#allocation2] sm:$0xff] %vm30_vm0, %v1084_v29 }
0x15ff   :  { %v1092_v48 = vsel %vm1091_vm3, %v1086_v35, %v981_v34 }
0x1600   :  { %1099 = vst.msk [vmem:[#allocation4] sm:$0xff] %vm30_vm0, %v1092_v48 }
0x1601 PF:  {}
0x1607   :  { %v1103_v3 = vld [vmem:[#allocation4] sm:$0xff] }
0x1608   :  { %1105 = vst.msk [vmem:[%s1698_s7] sm:$0xff] %vm30_vm0, %v1103_v3 }

</bundles_post_ra>
